<compile_context>
chip_gen: v6e
topology: v6e:2x2x1
jax: 0.10.0
libtpu: 0.0.40
codegen_flags: <defaults>
</compile_context>

<pallas_src>
import functools

import jax
import jax.numpy as jnp
import numpy as np
from jax.experimental import pallas as pl
from jax.experimental.pallas import tpu as pltpu


# ----------------------------------------------------------------------------
# Pallas kernel: one grid step == `parts_per_step` parts of the PCB head.
# ----------------------------------------------------------------------------
def _pcb_rpp_kernel(x_ref, pw_ref, w_ref, off_ref, out_ref):
    # x_ref   : (N*HW, C)      f32   transposed feature map (same block each step)
    # pw_ref  : (PH, N, N*HW)  f32   expanded adaptive-avg-pool matrices
    # w_ref   : (PH, C, F)     bf16  1x1-conv weight with BN scale folded in
    # off_ref : (PH, 1, F)     f32   folded BN offset
    # out_ref : (PH, N, F)     f32   part features
    parts_per_step = w_ref.shape[0]
    x = x_ref[...]                                        # (N*HW, C) f32

    for j in range(parts_per_step):                       # static unroll
        # Adaptive average pool as an MXU matmul (exact PyTorch region
        # weights are baked into pw): (N, N*HW) @ (N*HW, C) -> (N, C).
        pooled = jnp.dot(pw_ref[j], x,
                         preferred_element_type=jnp.float32)

        # 1x1 conv (no bias) with folded BN scale: bf16 MXU inputs,
        # f32 accumulation.
        y = jnp.dot(pooled.astype(jnp.bfloat16), w_ref[j],
                    preferred_element_type=jnp.float32)   # (N, F)

        # BN offset (eval mode, folded) + ReLU.
        y = y + off_ref[j]                                # broadcast (1, F)
        out_ref[j] = jnp.maximum(y, 0.0).astype(out_ref.dtype)


# ----------------------------------------------------------------------------
# Wrapper
# ----------------------------------------------------------------------------
def _expanded_pool_weights(N, H, W, num_parts):
    """Exact nn.AdaptiveAvgPool2d((num_parts, 1)) region weights, expanded so
    pooling is a plain matmul against x transposed to (N*H*W, C).

    Returns PW with shape (P, N, N*H*W) where
      PW[p, n, n*H*W + h*W + w] = 1/region_size  if h is in part p's row range.
    """
    HW = H * W
    pw = np.zeros((num_parts, N, N * HW), dtype=np.float32)
    for p in range(num_parts):
        start = (p * H) // num_parts
        end = -((-(p + 1) * H) // num_parts)  # ceil((p+1)*H / P)
        inv = 1.0 / float((end - start) * W)
        for n in range(N):
            base = n * HW
            pw[p, n, base + start * W: base + end * W] = inv
    return jnp.asarray(pw)


@functools.partial(jax.jit, static_argnames=("num_parts",))
def pcb_rpp_forward(x, conv_w, bn_scale, bn_offset, pool_w, *, num_parts):
    """
    x        : (N, 512, H, W) float32  (NCHW, like PyTorch)
    conv_w   : (P, 512, 256)  float32
    bn_scale : (P, 1, 256)    float32  (gamma / sqrt(var + eps))
    bn_offset: (P, 1, 256)    float32  (beta - mean * scale)
    pool_w   : (P, N, N*H*W)  float32  (from _expanded_pool_weights)
    returns  : (P, N, 256)    float32
    """
    N, C, H, W = x.shape
    P = num_parts
    F = conv_w.shape[-1]
    HW = H * W

    # Layout plumbing (outside the kernel): put C=512 on the dense lane axis
    # so both matmuls inside the kernel are plain A @ B on the MXU.
    x_t = jnp.transpose(x, (0, 2, 3, 1)).reshape(N * HW, C)

    # Fold the BN scale into the conv weight and cast to bf16 — halves the
    # dominant HBM traffic; accumulation stays f32 inside the kernel.
    w_folded = (conv_w * bn_scale).astype(jnp.bfloat16)          # (P, C, F)

    # 2 grid steps (marked "parallel") keep both v7x TensorCores busy; on
    # single-TC chips it is just 2 cheap sequential steps.
    G = 2 if (P % 2 == 0 and P > 1) else 1
    PH = P // G

    out = pl.pallas_call(
        _pcb_rpp_kernel,
        out_shape=jax.ShapeDtypeStruct((P, N, F), jnp.float32),
        grid_spec=pltpu.PrefetchScalarGridSpec(
            num_scalar_prefetch=0,
            grid=(G,),
            in_specs=[
                pl.BlockSpec((N * HW, C), lambda g: (0, 0)),         # x_t (same block)
                pl.BlockSpec((PH, N, N * HW), lambda g: (g, 0, 0)),  # pool matrices
                pl.BlockSpec((PH, C, F), lambda g: (g, 0, 0)),       # folded conv w (bf16)
                pl.BlockSpec((PH, 1, F), lambda g: (g, 0, 0)),       # bn offset
            ],
            out_specs=pl.BlockSpec((PH, N, F), lambda g: (g, 0, 0)),
        ),
        compiler_params=pltpu.CompilerParams(
            dimension_semantics=("parallel",)),
    )(x_t, pool_w, w_folded, bn_offset)
    return out


# ----------------------------------------------------------------------------
# Pure-JAX reference (mirrors the PyTorch forward, eval-mode BN, full f32)
# ----------------------------------------------------------------------------
def pcb_rpp_reference(x, conv_w, bn_scale, bn_offset, num_parts):
    N, C, H, W = x.shape
    outs = []
    for p in range(num_parts):
        start = (p * H) // num_parts
        end = -((-(p + 1) * H) // num_parts)
        pooled = jnp.mean(x[:, :, start:end, :], axis=(2, 3))          # (N, C)
        y = pooled @ conv_w[p]                                         # (N, F)
        y = y * bn_scale[p, 0] + bn_offset[p, 0]
        y = jnp.maximum(y, 0.0)
        outs.append(y)
    return jnp.stack(outs, axis=0)


if __name__ == "__main__":
    num_parts = 6
    N, C, H, W = 2, 512, 12, 8
    F = 256
    eps = 1e-5

    key = jax.random.PRNGKey(0)
    kx, kw, kg, kb, km, kv = jax.random.split(key, 6)

    # Input feature map (NCHW, as the PyTorch module expects).
    x = jax.random.normal(kx, (N, C, H, W), dtype=jnp.float32)

    # Deterministic parameter init (synthetic, shapes match the module).
    conv_w = 0.02 * jax.random.normal(kw, (num_parts, C, F), dtype=jnp.float32)
    gamma = 1.0 + 0.1 * jax.random.normal(kg, (num_parts, F), dtype=jnp.float32)
    beta = 0.1 * jax.random.normal(kb, (num_parts, F), dtype=jnp.float32)
    running_mean = 0.05 * jax.random.normal(km, (num_parts, F), dtype=jnp.float32)
    running_var = 1.0 + 0.1 * jnp.abs(jax.random.normal(kv, (num_parts, F),
                                                        dtype=jnp.float32))

    # Fold eval-mode BatchNorm (conv has no bias) into scale / offset.
    scale = gamma / jnp.sqrt(running_var + eps)                 # (P, F)
    offset = beta - running_mean * scale                        # (P, F)
    bn_scale = scale[:, None, :]                                # (P, 1, F)
    bn_offset = offset[:, None, :]                              # (P, 1, F)

    pool_w = _expanded_pool_weights(N, H, W, num_parts)         # (P, N, N*H*W)

    out = pcb_rpp_forward(x, conv_w, bn_scale, bn_offset, pool_w,
                          num_parts=num_parts)
    out = jax.block_until_ready(out)

    # Check against the pure-JAX f32 reference (tolerances account for the
    # bf16 weight / activation cast inside the kernel).
    ref = pcb_rpp_reference(x, conv_w, bn_scale, bn_offset, num_parts)
    np.testing.assert_allclose(np.asarray(out), np.asarray(ref),
                               rtol=2e-2, atol=1e-2)

    # Mirror the PyTorch return type: a list of (N, 256) part features.
    part_features = [out[p] for p in range(num_parts)]
    assert len(part_features) == num_parts
    assert part_features[0].shape == (N, F)

    print("KERNEL_OK")
</pallas_src>

<mosaic_0001>
module attributes {stable_mosaic.version = 11 : i64} {
  func.func @_pcb_rpp_kernel(%arg0: i32, %arg1: memref<192x512xf32, #tpu.memory_space<vmem>>, %arg2: memref<3x2x192xf32, #tpu.memory_space<vmem>>, %arg3: memref<3x512x256xbf16, #tpu.memory_space<vmem>>, %arg4: memref<3x1x256xf32, #tpu.memory_space<vmem>>, %arg5: memref<3x2x256xf32, #tpu.memory_space<vmem>>) attributes {dimension_semantics = [#tpu.dimension_semantics<parallel>], iteration_bounds = array<i64: 2>, scalar_prefetch = 0 : i64, scratch_operands = 0 : i64, tpu.core_type = #tpu.core_type<tc>, window_params = [{pipeline_mode = #tpu.pipeline_mode<synchronous>, transform_indices = @transform_0, window_bounds = array<i64: 192, 512>}, {transform_indices = @transform_1, window_bounds = array<i64: 3, 2, 192>}, {transform_indices = @transform_2, window_bounds = array<i64: 3, 512, 256>}, {transform_indices = @transform_3, window_bounds = array<i64: 3, 1, 256>}, {transform_indices = @transform_4, window_bounds = array<i64: 3, 2, 256>}]} {
    %c0 = arith.constant 0 : index
    %c0_0 = arith.constant 0 : index
    %0 = vector.load %arg1[%c0, %c0_0] : memref<192x512xf32, #tpu.memory_space<vmem>>, vector<192x512xf32>
    %c0_1 = arith.constant 0 : index
    %c0_2 = arith.constant 0 : index
    %c0_3 = arith.constant 0 : index
    %1 = vector.load %arg2[%c0_1, %c0_2, %c0_3] : memref<3x2x192xf32, #tpu.memory_space<vmem>>, vector<1x2x192xf32>
    %2 = vector.shape_cast %1 : vector<1x2x192xf32> to vector<2x192xf32>
    %cst = arith.constant dense<0.000000e+00> : vector<2x512xf32>
    %3 = tpu.matmul %2, %0, %cst {dimension_numbers = #tpu.dot_dimension_numbers<[1], [0], [0], [1], [0, 0, 1, 1], [], []>} : vector<2x192xf32>, vector<192x512xf32>, vector<2x512xf32> -> vector<2x512xf32>
    %4 = arith.truncf %3 : vector<2x512xf32> to vector<2x512xbf16>
    %c0_4 = arith.constant 0 : index
    %c0_5 = arith.constant 0 : index
    %c0_6 = arith.constant 0 : index
    %5 = vector.load %arg3[%c0_4, %c0_5, %c0_6] : memref<3x512x256xbf16, #tpu.memory_space<vmem>>, vector<1x512x256xbf16>
    %6 = vector.shape_cast %5 : vector<1x512x256xbf16> to vector<512x256xbf16>
    %cst_7 = arith.constant dense<0.000000e+00> : vector<2x256xf32>
    %7 = tpu.matmul %4, %6, %cst_7 {dimension_numbers = #tpu.dot_dimension_numbers<[1], [0], [0], [1], [0, 0, 1, 1], [], []>} : vector<2x512xbf16>, vector<512x256xbf16>, vector<2x256xf32> -> vector<2x256xf32>
    %c0_8 = arith.constant 0 : index
    %c0_9 = arith.constant 0 : index
    %c0_10 = arith.constant 0 : index
    %8 = vector.load %arg4[%c0_8, %c0_9, %c0_10] : memref<3x1x256xf32, #tpu.memory_space<vmem>>, vector<1x1x256xf32>
    %9 = vector.shape_cast %8 : vector<1x1x256xf32> to vector<1x256xf32>
    %10 = vector.broadcast %9 : vector<1x256xf32> to vector<2x256xf32>
    %11 = arith.addf %7, %10 : vector<2x256xf32>
    %cst_11 = arith.constant 0.000000e+00 : f32
    %12 = vector.broadcast %cst_11 : f32 to vector<2x256xf32>
    %13 = arith.maximumf %11, %12 : vector<2x256xf32>
    %c0_12 = arith.constant 0 : index
    %c0_13 = arith.constant 0 : index
    %c0_14 = arith.constant 0 : index
    %14 = vector.load %arg5[%c0_12, %c0_13, %c0_14] : memref<3x2x256xf32, #tpu.memory_space<vmem>>, vector<1x2x256xf32>
    %15 = vector.shape_cast %14 : vector<1x2x256xf32> to vector<2x256xf32>
    %16 = vector.shape_cast %13 : vector<2x256xf32> to vector<1x2x256xf32>
    tpu.vector_store %arg5[%c0_12, %c0_13, %c0_14], %16 {strides = array<i32>} : memref<3x2x256xf32, #tpu.memory_space<vmem>>, vector<1x2x256xf32>,
    %c1 = arith.constant 1 : index
    %c0_15 = arith.constant 0 : index
    %c0_16 = arith.constant 0 : index
    %17 = vector.load %arg2[%c1, %c0_15, %c0_16] : memref<3x2x192xf32, #tpu.memory_space<vmem>>, vector<1x2x192xf32>
    %18 = vector.shape_cast %17 : vector<1x2x192xf32> to vector<2x192xf32>
    %cst_17 = arith.constant dense<0.000000e+00> : vector<2x512xf32>
    %19 = tpu.matmul %18, %0, %cst_17 {dimension_numbers = #tpu.dot_dimension_numbers<[1], [0], [0], [1], [0, 0, 1, 1], [], []>} : vector<2x192xf32>, vector<192x512xf32>, vector<2x512xf32> -> vector<2x512xf32>
    %20 = arith.truncf %19 : vector<2x512xf32> to vector<2x512xbf16>
    %c1_18 = arith.constant 1 : index
    %c0_19 = arith.constant 0 : index
    %c0_20 = arith.constant 0 : index
    %21 = vector.load %arg3[%c1_18, %c0_19, %c0_20] : memref<3x512x256xbf16, #tpu.memory_space<vmem>>, vector<1x512x256xbf16>
    %22 = vector.shape_cast %21 : vector<1x512x256xbf16> to vector<512x256xbf16>
    %cst_21 = arith.constant dense<0.000000e+00> : vector<2x256xf32>
    %23 = tpu.matmul %20, %22, %cst_21 {dimension_numbers = #tpu.dot_dimension_numbers<[1], [0], [0], [1], [0, 0, 1, 1], [], []>} : vector<2x512xbf16>, vector<512x256xbf16>, vector<2x256xf32> -> vector<2x256xf32>
    %c1_22 = arith.constant 1 : index
    %c0_23 = arith.constant 0 : index
    %c0_24 = arith.constant 0 : index
    %24 = vector.load %arg4[%c1_22, %c0_23, %c0_24] : memref<3x1x256xf32, #tpu.memory_space<vmem>>, vector<1x1x256xf32>
    %25 = vector.shape_cast %24 : vector<1x1x256xf32> to vector<1x256xf32>
    %26 = vector.broadcast %25 : vector<1x256xf32> to vector<2x256xf32>
    %27 = arith.addf %23, %26 : vector<2x256xf32>
    %cst_25 = arith.constant 0.000000e+00 : f32
    %28 = vector.broadcast %cst_25 : f32 to vector<2x256xf32>
    %29 = arith.maximumf %27, %28 : vector<2x256xf32>
    %c1_26 = arith.constant 1 : index
    %c0_27 = arith.constant 0 : index
    %c0_28 = arith.constant 0 : index
    %30 = vector.load %arg5[%c1_26, %c0_27, %c0_28] : memref<3x2x256xf32, #tpu.memory_space<vmem>>, vector<1x2x256xf32>
    %31 = vector.shape_cast %30 : vector<1x2x256xf32> to vector<2x256xf32>
    %32 = vector.shape_cast %29 : vector<2x256xf32> to vector<1x2x256xf32>
    tpu.vector_store %arg5[%c1_26, %c0_27, %c0_28], %32 {strides = array<i32>} : memref<3x2x256xf32, #tpu.memory_space<vmem>>, vector<1x2x256xf32>,
    %c2 = arith.constant 2 : index
    %c0_29 = arith.constant 0 : index
    %c0_30 = arith.constant 0 : index
    %33 = vector.load %arg2[%c2, %c0_29, %c0_30] : memref<3x2x192xf32, #tpu.memory_space<vmem>>, vector<1x2x192xf32>
    %34 = vector.shape_cast %33 : vector<1x2x192xf32> to vector<2x192xf32>
    %cst_31 = arith.constant dense<0.000000e+00> : vector<2x512xf32>
    %35 = tpu.matmul %34, %0, %cst_31 {dimension_numbers = #tpu.dot_dimension_numbers<[1], [0], [0], [1], [0, 0, 1, 1], [], []>} : vector<2x192xf32>, vector<192x512xf32>, vector<2x512xf32> -> vector<2x512xf32>
    %36 = arith.truncf %35 : vector<2x512xf32> to vector<2x512xbf16>
    %c2_32 = arith.constant 2 : index
    %c0_33 = arith.constant 0 : index
    %c0_34 = arith.constant 0 : index
    %37 = vector.load %arg3[%c2_32, %c0_33, %c0_34] : memref<3x512x256xbf16, #tpu.memory_space<vmem>>, vector<1x512x256xbf16>
    %38 = vector.shape_cast %37 : vector<1x512x256xbf16> to vector<512x256xbf16>
    %cst_35 = arith.constant dense<0.000000e+00> : vector<2x256xf32>
    %39 = tpu.matmul %36, %38, %cst_35 {dimension_numbers = #tpu.dot_dimension_numbers<[1], [0], [0], [1], [0, 0, 1, 1], [], []>} : vector<2x512xbf16>, vector<512x256xbf16>, vector<2x256xf32> -> vector<2x256xf32>
    %c2_36 = arith.constant 2 : index
    %c0_37 = arith.constant 0 : index
    %c0_38 = arith.constant 0 : index
    %40 = vector.load %arg4[%c2_36, %c0_37, %c0_38] : memref<3x1x256xf32, #tpu.memory_space<vmem>>, vector<1x1x256xf32>
    %41 = vector.shape_cast %40 : vector<1x1x256xf32> to vector<1x256xf32>
    %42 = vector.broadcast %41 : vector<1x256xf32> to vector<2x256xf32>
    %43 = arith.addf %39, %42 : vector<2x256xf32>
    %cst_39 = arith.constant 0.000000e+00 : f32
    %44 = vector.broadcast %cst_39 : f32 to vector<2x256xf32>
    %45 = arith.maximumf %43, %44 : vector<2x256xf32>
    %c2_40 = arith.constant 2 : index
    %c0_41 = arith.constant 0 : index
    %c0_42 = arith.constant 0 : index
    %46 = vector.load %arg5[%c2_40, %c0_41, %c0_42] : memref<3x2x256xf32, #tpu.memory_space<vmem>>, vector<1x2x256xf32>
    %47 = vector.shape_cast %46 : vector<1x2x256xf32> to vector<2x256xf32>
    %48 = vector.shape_cast %45 : vector<2x256xf32> to vector<1x2x256xf32>
    tpu.vector_store %arg5[%c2_40, %c0_41, %c0_42], %48 {strides = array<i32>} : memref<3x2x256xf32, #tpu.memory_space<vmem>>, vector<1x2x256xf32>,
    return
  }
  func.func @transform_0(%arg0: i32) -> (i32, i32) {
    %c0_i32 = arith.constant 0 : i32
    %c0_i32_0 = arith.constant 0 : i32
    %c0_i32_1 = arith.constant 0 : i32
    return %c0_i32, %c0_i32_0 : i32, i32
  }
  func.func @transform_1(%arg0: i32) -> (i32, i32, i32) {
    %c0_i32 = arith.constant 0 : i32
    %c0_i32_0 = arith.constant 0 : i32
    %c0_i32_1 = arith.constant 0 : i32
    return %arg0, %c0_i32, %c0_i32_0 : i32, i32, i32
  }
  func.func @transform_2(%arg0: i32) -> (i32, i32, i32) {
    %c0_i32 = arith.constant 0 : i32
    %c0_i32_0 = arith.constant 0 : i32
    %c0_i32_1 = arith.constant 0 : i32
    return %arg0, %c0_i32, %c0_i32_0 : i32, i32, i32
  }
  func.func @transform_3(%arg0: i32) -> (i32, i32, i32) {
    %c0_i32 = arith.constant 0 : i32
    %c0_i32_0 = arith.constant 0 : i32
    %c0_i32_1 = arith.constant 0 : i32
    return %arg0, %c0_i32, %c0_i32_0 : i32, i32, i32
  }
  func.func @transform_4(%arg0: i32) -> (i32, i32, i32) {
    %c0_i32 = arith.constant 0 : i32
    %c0_i32_0 = arith.constant 0 : i32
    %c0_i32_1 = arith.constant 0 : i32
    return %arg0, %c0_i32, %c0_i32_0 : i32, i32, i32
  }
}

</mosaic_0001>

<bundles_post_ra>
// kernel: pcb_rpp_forward.1
= control target key start
LH: loop header
LB: loop body
LE: loop exit
PB: predicated region body
PF: predicated region fallthrough
CT: control target
= control target key end

     0   :  { %9 = vsyncpa [#allocation3], 0  ;;  %s4592_s0 = inlined_call_operand.vmem [shape: f32[192,512], index: 0, kind: input, shape index: {}]   ;;  %s4593_s1 = inlined_call_operand.vmem [shape: f32[6,2,192], index: 1, kind: input, shape index: {}]   ;;  %s4594_s2 = inlined_call_operand.vmem [shape: bf16[6,512,256], index: 2, kind: input, shape index: {}]   ;;  %s4595_s3 = inlined_call_operand.vmem [shape: f32[6,1,256], index: 3, kind: input, shape index: {}]   ;;  %s4596_s4 = inlined_call_operand.hbm [shape: f32[6,2,256], index: 4, kind: output, shape index: {}]  }
   0x1   :  { %11 = vsyncpa [#allocation3 + $0x1], 0  ;;  %s3280_s15 = smov 0   ;;  %s3282_s16 = smov 0  }
   0x2   :  { %s3284_s17 = smov 0   ;;  %s3286_s18 = smov 0  }
   0x3 LB: > { %s3301_s19 = sadd.s32 4294967295, %s3250_s18   ;;  %s2408_s20 = sadd.s32 4294967294, %s3250_s18   ;;  %s3250_s18 = sphi %s3286_s18, %s4699_s18   ;;  %s3246_s17 = sphi %s3284_s17, %s4698_s17   ;;  %s3242_s16 = sphi %s3282_s16, %s4697_s16   ;;  %s3238_s15 = sphi %s3280_s15, %s4696_s15  }
   0x4   : > { %s3305_s21 = sadd.s32 1, %s3250_s18   ;;  %s123_s22 = sadd.s32 1, %s3246_s17 }
   0x5   : > { %s120_s23 = ssub.s32 %s3250_s18, %s3305_s21  ;;  %p133_p0 = scmp.ne.s32.totalorder %s3246_s17, %s3242_s16 }
   0x6   : > { %p121_p1 = scmp.eq.s32.totalorder %s120_s23, 0  ;;  %p134_p2 = scmp.eq.s32.totalorder %s3301_s19, 1 }
   0x7   : > { %p139_p3 = scmp.ne.s32.totalorder %s3242_s16, %s3238_s15  ;;  %p140_p4 = scmp.eq.s32.totalorder %s2408_s20, 1 }
   0x8   : > { %s3316_s24 = scalar_select %p121_p1, %s3246_s17, %s123_s22  }
   0x9   : > { %p3318_p5 = por %p134_p2, %p133_p0  ;;  %p3322_p6 = por %p140_p4, %p139_p3 }
   0xa   : > { %p2411_p7 = scmp.ge.s32.totalorder %s3250_s18, 1  ;;  %p190_p8 = scmp.lt.s32.totalorder %s3250_s18, 3 }
   0xc   : > { %p191_p9 = pnand %p2411_p7, %p190_p8 }
   0xe   : > { %194 = sbr.rel (%p191_p9) target bundleno = 978 (0x3d2), region = 36 }
  0x13   : > { %v310_v0 = vld [vmem:[%s4592_s0 + $0x1e8] sm:$0xff]  ;;  %v312_v1 = vld [vmem:[%s4592_s0 + $0x1f8] sm:$0xff]  ;;  %v309_v2 = vld [vmem:[%s4592_s0 + $0x1e0] sm:$0xff]  ;;  %s228_s23 = smul.u32 3, %s3301_s19  ;;  %vm356_vm0 = vcmask 523264  }
  0x14   : > { %359 = vmatprep.subr.mxu0 %v310_v0  ;;  %430 = vmatprep.subr.mxu1 %v312_v1  ;;  %v311_v3 = vld [vmem:[%s4592_s0 + $0x1f0] sm:$0xff]  ;;  %v306_v4 = vld [vmem:[%s4592_s0 + $0x1c8] sm:$0xff]  ;;  %v308_v5 = vld [vmem:[%s4592_s0 + $0x1d8] sm:$0xff] }
  0x15   : > { %360 = vmatpush1.msra.mxu0 %v309_v2  ;;  %431 = vmatpush1.msra.mxu1 %v311_v3  ;;  %v305_v6 = vld [vmem:[%s4592_s0 + $0x1c0] sm:$0xff]  ;;  %v307_v7 = vld [vmem:[%s4592_s0 + $0x1d0] sm:$0xff]  ;;  %v302_v8 = vld [vmem:[%s4592_s0 + $0x1a8] sm:$0xff]  ;;  %p3529_p10 = scmp.lt.s32.totalorder %s228_s23, 5 }
  0x16   : > { %361 = vmatprep.subr.mxu0 %v306_v4  ;;  %432 = vmatprep.subr.mxu1 %v308_v5  ;;  %v304_v9 = vld [vmem:[%s4592_s0 + $0x1b8] sm:$0xff]  ;;  %v301_v10 = vld [vmem:[%s4592_s0 + $0x1a0] sm:$0xff]  ;;  %v303_v11 = vld [vmem:[%s4592_s0 + $0x1b0] sm:$0xff] }
  0x17   : > { %362 = vmatpush1.msra.mxu0 %v305_v6  ;;  %433 = vmatpush1.msra.mxu1 %v307_v7  ;;  %v298_v12 = vld [vmem:[%s4592_s0 + $0x188] sm:$0xff]  ;;  %v300_v13 = vld [vmem:[%s4592_s0 + $0x198] sm:$0xff]  ;;  %v297_v14 = vld [vmem:[%s4592_s0 + $0x180] sm:$0xff]  ;;  %s4701_s23 = smov (!%p3529_p10, %s228_s23), 5 }
  0x18   : > { %363 = vmatprep.subr.mxu0 %v302_v8  ;;  %434 = vmatprep.subr.mxu1 %v304_v9  ;;  %v299_v15 = vld [vmem:[%s4592_s0 + $0x190] sm:$0xff]  ;;  %v294_v16 = vld [vmem:[%s4592_s0 + $0x168] sm:$0xff]  ;;  %v296_v17 = vld [vmem:[%s4592_s0 + $0x178] sm:$0xff]  ;;  %s2758_s12 = sshll.u32 %s4701_s23, 9  ;;  %s2757_s5 = sshll.u32 %s4701_s23, 2 }
  0x19   : > { %364 = vmatpush1.msra.mxu0 %v301_v10  ;;  %435 = vmatpush1.msra.mxu1 %v303_v11  ;;  %v293_v18 = vld [vmem:[%s4592_s0 + $0x160] sm:$0xff]  ;;  %v295_v19 = vld [vmem:[%s4592_s0 + $0x170] sm:$0xff]  ;;  %v290_v20 = vld [vmem:[%s4592_s0 + $0x148] sm:$0xff]  ;;  %s3671_s29 = scalar_lea.vmem %s4594_s2, %s2758_s12  ;;  %s3761_s6 = scalar_lea.vmem %s4593_s1, %s2757_s5 }
  0x1a   : > { %365 = vmatprep.subr.mxu0 %v298_v12  ;;  %436 = vmatprep.subr.mxu1 %v300_v13  ;;  %v292_v21 = vld [vmem:[%s4592_s0 + $0x158] sm:$0xff]  ;;  %v289_v22 = vld [vmem:[%s4592_s0 + $0x140] sm:$0xff]  ;;  %v291_v23 = vld [vmem:[%s4592_s0 + $0x150] sm:$0xff]  ;;  %s2416_s27 = sshll.u32 %s4701_s23, 1  ;;  %s225_s23 = sand.u32 1, %s3242_s16  }
  0x1b   : > { %366 = vmatpush1.msra.mxu0 %v297_v14  ;;  %437 = vmatpush1.msra.mxu1 %v299_v15  ;;  %v286_v24 = vld [vmem:[%s4592_s0 + $0x128] sm:$0xff]  ;;  %v288_v25 = vld [vmem:[%s4592_s0 + $0x138] sm:$0xff]  ;;  %v285_v26 = vld [vmem:[%s4592_s0 + $0x120] sm:$0xff]  ;;  %s4229_s8 = scalar_lea.vmem %s4595_s3, %s2416_s27  ;;  %s2764_s5 = smul.u32 12, %s225_s23 }
  0x1c   : > { %367 = vmatprep.subr.mxu0 %v294_v16  ;;  %438 = vmatprep.subr.mxu1 %v296_v17  ;;  %v287_v27 = vld [vmem:[%s4592_s0 + $0x130] sm:$0xff]  ;;  %v282_v28 = vld [vmem:[%s4592_s0 + $0x108] sm:$0xff]  ;;  %v284_v29 = vld [vmem:[%s4592_s0 + $0x118] sm:$0xff]  ;;  %s3252_s12 = smov [#allocation2]  }
  0x1d   : > { %368 = vmatpush1.msra.mxu0 %v293_v18  ;;  %439 = vmatpush1.msra.mxu1 %v295_v19  ;;  %v281_v30 = vld [vmem:[%s4592_s0 + $0x100] sm:$0xff]  ;;  %v283_v31 = vld [vmem:[%s4592_s0 + $0x110] sm:$0xff]  ;;  %v3427_v32 = vld [vmem:[%s4592_s0 + $0xe8] sm:$0xff]  ;;  %s4241_s9 = scalar_lea.vmem [#allocation2], %s2764_s5  ;;  %s3194_s7 = sshll.u32 %s3252_s12, 4  ;;  %s3195_s7 = int_to_ptr.vmem [resolvable:$false] %s3194_s7 }
  0x1e   : > { %369 = vmatprep.subr.mxu0 %v290_v20  ;;  %440 = vmatprep.subr.mxu1 %v292_v21  ;;  %v3432_v33 = vld [vmem:[%s4592_s0 + $0xf8] sm:$0xff]  ;;  %v3437_v34 = vld [vmem:[%s4592_s0 + $0xe0] sm:$0xff]  ;;  %v3442_v35 = vld [vmem:[%s4592_s0 + $0xf0] sm:$0xff]  ;;  %s2322_s28 = sshll.u32 %s4241_s9, 4  ;;  %s3196_s5 = scalar_lea.vmem %s3195_s7, 384  ;;  %s4542_s28 = int_to_ptr.vmem [resolvable:$true] %s2322_s28 }
  0x1f   : > { %370 = vmatpush1.msra.mxu0 %v289_v22  ;;  %441 = vmatpush1.msra.mxu1 %v291_v23  ;;  %v3447_v36 = vld [vmem:[%s4592_s0 + $0xc8] sm:$0xff]  ;;  %v3452_v37 = vld [vmem:[%s4592_s0 + $0xd8] sm:$0xff]  ;;  %v3459_v38 = vld [vmem:[%s4592_s0 + $0xc0] sm:$0xff]  ;;  %s3190_s27 = scalar_lea.vmem %s4542_s28, 192  ;;  %p3197_p0 = scmp.lt.s32.totalorder %s4542_s28, %s3195_s7 }
  0x20   : > { %371 = vmatprep.subr.mxu0 %v286_v24  ;;  %442 = vmatprep.subr.mxu1 %v288_v25  ;;  %v3464_v39 = vld [vmem:[%s4592_s0 + $0xd0] sm:$0xff]  ;;  %v3471_v40 = vld [vmem:[%s4592_s0 + $0xa8] sm:$0xff]  ;;  %v3476_v41 = vld [vmem:[%s4592_s0 + $0xb8] sm:$0xff]  ;;  %p3191_p11 = scmp.ne.s32.totalorder %s4542_s28, %s3190_s27  ;;  %p3198_p1 = scmp.lt.s32.totalorder %s3196_s5, %s3190_s27 }
  0x21   : > { %372 = vmatpush1.msra.mxu0 %v285_v26  ;;  %443 = vmatpush1.msra.mxu1 %v287_v27  ;;  %v3484_v42 = vld [vmem:[%s4592_s0 + $0xa0] sm:$0xff]  ;;  %v3489_v43 = vld [vmem:[%s4592_s0 + $0xb0] sm:$0xff]  ;;  %v3496_v44 = vld [vmem:[%s4592_s0 + $0x88] sm:$0xff] }
  0x22   : > { %373 = vmatprep.subr.mxu0 %v282_v28  ;;  %444 = vmatprep.subr.mxu1 %v284_v29  ;;  %v3501_v45 = vld [vmem:[%s4592_s0 + $0x98] sm:$0xff]  ;;  %v3508_v46 = vld [vmem:[%s4592_s0 + $0x80] sm:$0xff]  ;;  %v3513_v47 = vld [vmem:[%s4592_s0 + $0x90] sm:$0xff]  ;;  %p3192_p12 = pnand %p3191_p11, %p3318_p5  ;;  %p3199_p2 = por %p3198_p1, %p3197_p0 }
  0x23   : > { %374 = vmatpush1.msra.mxu0 %v281_v30  ;;  %445 = vmatpush1.msra.mxu1 %v283_v31  ;;  %v3520_v48 = vld [vmem:[%s4592_s0 + $0x68] sm:$0xff]  ;;  %v3525_v49 = vld [vmem:[%s4592_s0 + $0x78] sm:$0xff]  ;;  %v3538_v50 = vld [vmem:[%s4592_s0 + $0x60] sm:$0xff] }
  0x24   : > { %375 = vmatprep.subr.mxu0 %v3427_v32  ;;  %446 = vmatprep.subr.mxu1 %v3432_v33  ;;  %v3543_v51 = vld [vmem:[%s4592_s0 + $0x70] sm:$0xff]  ;;  %v3550_v52 = vld [vmem:[%s4592_s0 + $0x48] sm:$0xff]  ;;  %v3555_v53 = vld [vmem:[%s4592_s0 + $0x58] sm:$0xff]  ;;  %p3193_p13 = pneg %p3192_p12 }
  0x25   : > { %376 = vmatpush1.msra.mxu0 %v3437_v34  ;;  %447 = vmatpush1.msra.mxu1 %v3442_v35  ;;  %v3562_v54 = vld [vmem:[%s4592_s0 + $0x40] sm:$0xff]  ;;  %v3567_v55 = vld [vmem:[%s4592_s0 + $0x50] sm:$0xff]  ;;  %v3574_v56 = vld [vmem:[%s4592_s0 + $0x28] sm:$0xff] }
  0x26   : > { %377 = vmatprep.subr.mxu0 %v3447_v36  ;;  %448 = vmatprep.subr.mxu1 %v3452_v37  ;;  %v3579_v57 = vld [vmem:[%s4592_s0 + $0x38] sm:$0xff]  ;;  %v3592_v58 = vld [vmem:[%s4592_s0 + $0x20] sm:$0xff]  ;;  %v3597_v59 = vld [vmem:[%s4592_s0 + $0x30] sm:$0xff]  ;;  %p3200_p3 = pnand %p3199_p2, %p3193_p13 }
  0x27   : > { %378 = vmatpush1.msra.mxu0 %v3459_v38  ;;  %449 = vmatpush1.msra.mxu1 %v3464_v39  ;;  %v3604_v60 = vld [vmem:[%s4592_s0 + $0x8] sm:$0xff]  ;;  %v3609_v61 = vld [vmem:[%s4592_s0 + $0x18] sm:$0xff]  ;;  %v3614_v62 = vld [vmem:[%s4592_s0] sm:$0xff] }
  0x28   : > { %379 = vmatprep.subr.mxu0 %v3471_v40  ;;  %450 = vmatprep.subr.mxu1 %v3476_v41  ;;  %v3622_v63 = vld [vmem:[%s4592_s0 + $0x10] sm:$0xff]  ;;  %v3627_v0 = vld [vmem:[%s4592_s0 + $0x2e8] sm:$0xff]  ;;  %v3632_v1 = vld [vmem:[%s4592_s0 + $0x2f8] sm:$0xff] }
  0x29   : > { %380 = vmatpush1.msra.mxu0 %v3484_v42  ;;  %451 = vmatpush1.msra.mxu1 %v3489_v43  ;;  %v3639_v2 = vld [vmem:[%s4592_s0 + $0x2e0] sm:$0xff]  ;;  %v3644_v3 = vld [vmem:[%s4592_s0 + $0x2f0] sm:$0xff]  ;;  %v3649_v4 = vld [vmem:[%s4592_s0 + $0x2c8] sm:$0xff] }
  0x2a   : > { %381 = vmatprep.subr.mxu0 %v3496_v44  ;;  %452 = vmatprep.subr.mxu1 %v3501_v45  ;;  %v3656_v5 = vld [vmem:[%s4592_s0 + $0x2d8] sm:$0xff]  ;;  %v3661_v6 = vld [vmem:[%s4592_s0 + $0x2c0] sm:$0xff]  ;;  %v3666_v7 = vld [vmem:[%s4592_s0 + $0x2d0] sm:$0xff] }
  0x2b   : > { %382 = vmatpush1.msra.mxu0 %v3508_v46  ;;  %453 = vmatpush1.msra.mxu1 %v3513_v47  ;;  %v3678_v8 = vld [vmem:[%s4592_s0 + $0x2a8] sm:$0xff]  ;;  %v3683_v9 = vld [vmem:[%s4592_s0 + $0x2b8] sm:$0xff]  ;;  %v3690_v10 = vld [vmem:[%s4592_s0 + $0x2a0] sm:$0xff] }
  0x2c   : > { %383 = vmatprep.subr.mxu0 %v3520_v48  ;;  %454 = vmatprep.subr.mxu1 %v3525_v49  ;;  %v3695_v11 = vld [vmem:[%s4592_s0 + $0x2b0] sm:$0xff]  ;;  %v3702_v12 = vld [vmem:[%s4592_s0 + $0x288] sm:$0xff]  ;;  %v3707_v13 = vld [vmem:[%s4592_s0 + $0x298] sm:$0xff] }
  0x2d   : > { %384 = vmatpush1.msra.mxu0 %v3538_v50  ;;  %455 = vmatpush1.msra.mxu1 %v3543_v51  ;;  %v3714_v14 = vld [vmem:[%s4592_s0 + $0x280] sm:$0xff]  ;;  %v3719_v15 = vld [vmem:[%s4592_s0 + $0x290] sm:$0xff]  ;;  %v3727_v16 = vld [vmem:[%s4592_s0 + $0x268] sm:$0xff] }
  0x2e   : > { %385 = vmatprep.subr.mxu0 %v3550_v52  ;;  %456 = vmatprep.subr.mxu1 %v3555_v53  ;;  %v3732_v17 = vld [vmem:[%s4592_s0 + $0x278] sm:$0xff]  ;;  %v3739_v18 = vld [vmem:[%s4592_s0 + $0x260] sm:$0xff]  ;;  %v3744_v19 = vld [vmem:[%s4592_s0 + $0x270] sm:$0xff] }
  0x2f   : > { %386 = vmatpush1.msra.mxu0 %v3562_v54  ;;  %457 = vmatpush1.msra.mxu1 %v3567_v55  ;;  %4632 = vst [vmem:[#allocation5_spill] sm:$0xff] %v3732_v17  ;;  %4633 = vst [vmem:[#allocation6_spill] sm:$0xff] %v3739_v18  ;;  %v3751_v20 = vld [vmem:[%s4592_s0 + $0x248] sm:$0xff]  ;;  %v3756_v21 = vld [vmem:[%s4592_s0 + $0x258] sm:$0xff] }
  0x30   : > { %387 = vmatprep.subr.mxu0 %v3574_v56  ;;  %458 = vmatprep.subr.mxu1 %v3579_v57  ;;  %4634 = vst [vmem:[#allocation7_spill] sm:$0xff] %v3744_v19  ;;  %4635 = vst [vmem:[#allocation8_spill] sm:$0xff] %v3751_v20  ;;  %v3768_v22 = vld [vmem:[%s4592_s0 + $0x240] sm:$0xff]  ;;  %v3773_v23 = vld [vmem:[%s4592_s0 + $0x250] sm:$0xff] }
  0x31   : > { %388 = vmatpush1.msra.mxu0 %v3592_v58  ;;  %459 = vmatpush1.msra.mxu1 %v3597_v59  ;;  %4636 = vst [vmem:[#allocation9_spill] sm:$0xff] %v3756_v21  ;;  %4637 = vst [vmem:[#allocation10_spill] sm:$0xff] %v3768_v22  ;;  %v3780_v24 = vld [vmem:[%s4592_s0 + $0x228] sm:$0xff]  ;;  %v3785_v25 = vld [vmem:[%s4592_s0 + $0x238] sm:$0xff] }
  0x32   : > { %389 = vmatprep.subr.mxu0 %v3604_v60  ;;  %460 = vmatprep.subr.mxu1 %v3609_v61  ;;  %4638 = vst [vmem:[#allocation11_spill] sm:$0xff] %v3773_v23  ;;  %4639 = vst [vmem:[#allocation12_spill] sm:$0xff] %v3780_v24  ;;  %v2417_v26 = vld.sshfl [vmem:[%s3761_s6] sm:$0x33 pattern:$0x76325410] }
  0x33   : > { %390 = vmatpush1.msra.mxu0 %v3614_v62  ;;  %461 = vmatpush1.msra.mxu1 %v3622_v63  ;;  %4640 = vst [vmem:[#allocation13_spill] sm:$0xff] %v3785_v25  ;;  %v3795_v27 = vld [vmem:[%s4592_s0 + $0x220] sm:$0xff]  ;;  %v3802_v28 = vld [vmem:[%s4592_s0 + $0x230] sm:$0xff]  ;;  %v3807_v29 = vld [vmem:[%s4592_s0 + $0x208] sm:$0xff] }
  0x34   : > { %407 = vmatprep.subr.mxu0 %v3627_v0  ;;  %478 = vmatprep.subr.mxu1 %v3632_v1  ;;  %4641 = vst [vmem:[#allocation14_spill] sm:$0xff] %v3795_v27  ;;  %4642 = vst [vmem:[#allocation15_spill] sm:$0xff] %v3802_v28  ;;  %v3814_v30 = vld [vmem:[%s4592_s0 + $0x218] sm:$0xff]  ;;  %v3819_v31 = vld [vmem:[%s4592_s0 + $0x200] sm:$0xff] }
  0x35   : > { %408 = vmatpush2.msra.mxu0 %v3639_v2  ;;  %479 = vmatpush2.msra.mxu1 %v3644_v3  ;;  %4643 = vst [vmem:[#allocation16_spill] sm:$0xff] %v3807_v29  ;;  %4644 = vst [vmem:[#allocation17_spill] sm:$0xff] %v3814_v30 }
  0x36   : > { %409 = vmatprep.subr.mxu0 %v3649_v4  ;;  %480 = vmatprep.subr.mxu1 %v3656_v5  ;;  %4645 = vst [vmem:[#allocation18_spill] sm:$0xff] %v3819_v31 }
  0x37   : > { %410 = vmatpush2.msra.mxu0 %v3661_v6  ;;  %481 = vmatpush2.msra.mxu1 %v3666_v7 }
  0x38   : > { %411 = vmatprep.subr.mxu0 %v3678_v8  ;;  %482 = vmatprep.subr.mxu1 %v3683_v9 }
  0x39   : > { %412 = vmatpush2.msra.mxu0 %v3690_v10  ;;  %483 = vmatpush2.msra.mxu1 %v3695_v11 }
  0x3a   : > { %413 = vmatprep.subr.mxu0 %v3702_v12  ;;  %484 = vmatprep.subr.mxu1 %v3707_v13 }
  0x3b   : > { %414 = vmatpush2.msra.mxu0 %v3714_v14  ;;  %485 = vmatpush2.msra.mxu1 %v3719_v15 }
  0x3c   : > { %415 = vmatprep.subr.mxu0 %v3727_v16  ;;  %486 = vmatprep.subr.mxu1 %v3732_v17  ;;  %v2892_v17 = vld [vmem:[%s3671_s29 + $0x94] ss:$8 sps:$4 sm:$0xff]  }
  0x3d   : > { %416 = vmatpush2.msra.mxu0 %v3739_v18  ;;  %487 = vmatpush2.msra.mxu1 %v3744_v19  ;;  %v2814_v19 = vld [vmem:[%s3671_s29 + $0x64] ss:$8 sps:$4 sm:$0xff]   ;;  %v2863_v18 = vld [vmem:[%s3671_s29 + $0x1e0] ss:$8 sps:$4 sm:$0xff]  }
  0x3e   : > { %417 = vmatprep.subr.mxu0 %v3751_v20  ;;  %488 = vmatprep.subr.mxu1 %v3756_v21  ;;  %v354_v21 = vcombine.high %v2417_v26, %v2417_v26  ;;  %v2809_v20 = vld [vmem:[%s3671_s29 + $0x170] ss:$8 sps:$4 sm:$0xff]  }
  0x3f   : > { %418 = vmatpush2.msra.mxu0 %v3768_v22  ;;  %489 = vmatpush2.msra.mxu1 %v3773_v23  ;;  %v3826_v23 = vld [vmem:[%s4592_s0 + $0x210] sm:$0xff] }
  0x40   : > { %419 = vmatprep.subr.mxu0 %v3780_v24  ;;  %490 = vmatprep.subr.mxu1 %v3785_v25  ;;  %4646 = vst [vmem:[#allocation19_spill] sm:$0xff] %v3826_v23  ;;  %v2806_v22 = vld [vmem:[%s3671_s29 + $0x70] ss:$8 sps:$4 sm:$0xff]   ;;  %v2808_v24 = vld [vmem:[%s3671_s29 + $0x74] ss:$8 sps:$4 sm:$0xff]  }
  0x41   : > { %420 = vmatpush2.msra.mxu0 %v3795_v27  ;;  %491 = vmatpush2.msra.mxu1 %v3802_v28  ;;  %v2811_v25 = vld [vmem:[%s3671_s29 + $0x174] ss:$8 sps:$4 sm:$0xff]   ;;  %v2817_v28 = vld [vmem:[%s3671_s29 + $0x164] ss:$8 sps:$4 sm:$0xff]  }
  0x42   : > { %421 = vmatprep.subr.mxu0 %v3807_v29  ;;  %492 = vmatprep.subr.mxu1 %v3814_v30  ;;  %v2812_v30 = vld [vmem:[%s3671_s29 + $0x60] ss:$8 sps:$4 sm:$0xff]   ;;  %v2820_v29 = vld [vmem:[%s3671_s29 + $0x54] ss:$8 sps:$4 sm:$0xff]  }
  0x43   : > { %422 = vmatpush2.msra.mxu0 %v3819_v31  ;;  %2418 = vmatprep.mubr.msk.f32.mxu0 %vm356_vm0, %v354_v21  ;;  %v2815_v31 = vld [vmem:[%s3671_s29 + $0x160] ss:$8 sps:$4 sm:$0xff]   ;;  %v2856_v27 = vld [vmem:[%s3671_s29 + $0xf4] ss:$8 sps:$4 sm:$0xff]  }
  0x44   : > { %493 = vmatpush2.msra.mxu1 %v3826_v23  ;;  %2419 = vmatprep.mubr.msk.f32.mxu1 %vm356_vm0, %v354_v21  ;;  %v2823_v23 = vld [vmem:[%s3671_s29 + $0x154] ss:$8 sps:$4 sm:$0xff]   ;;  %v2818_v21 = vld [vmem:[%s3671_s29 + $0x50] ss:$8 sps:$4 sm:$0xff]  }
  0x45   : > { %424 = vmatmul.mubr.f32.vlgmr.msra.gmra.mxu0 %v2417_v26  ;;  %495 = vmatmul.mubr.f32.vlgmr.msra.gmra.mxu1 %v2417_v26  ;;  %v2821_v26 = vld [vmem:[%s3671_s29 + $0x150] ss:$8 sps:$4 sm:$0xff]  }
  0x46   : > { %901 = vmatprep.subr.bf16.mxu0 %v2808_v24  ;;  %942 = vmatprep.subr.bf16.mxu1 %v2811_v25  ;;  %v2826_v24 = vld [vmem:[%s3671_s29 + $0x44] ss:$8 sps:$4 sm:$0xff]   ;;  %v2832_v25 = vld [vmem:[%s3671_s29 + $0x34] ss:$8 sps:$4 sm:$0xff]  }
  0x47   : > { %902 = vmatpush1.bf16.msra.mxu0 %v2806_v22  ;;  %943 = vmatpush1.bf16.msra.mxu1 %v2809_v20  ;;  %v2829_v22 = vld [vmem:[%s3671_s29 + $0x144] ss:$8 sps:$4 sm:$0xff]   ;;  %v2824_v20 = vld [vmem:[%s3671_s29 + $0x40] ss:$8 sps:$4 sm:$0xff]  }
  0x48   : > { %903 = vmatprep.subr.bf16.mxu0 %v2814_v19  ;;  %944 = vmatprep.subr.bf16.mxu1 %v2817_v28  ;;  %v2827_v19 = vld [vmem:[%s3671_s29 + $0x140] ss:$8 sps:$4 sm:$0xff]   ;;  %v2835_v28 = vld [vmem:[%s3671_s29 + $0x134] ss:$8 sps:$4 sm:$0xff]  }
  0x4b   : > { %904 = vmatpush1.bf16.msra.mxu0 %v2812_v30  ;;  %945 = vmatpush1.bf16.msra.mxu1 %v2815_v31  ;;  %v2830_v30 = vld [vmem:[%s3671_s29 + $0x30] ss:$8 sps:$4 sm:$0xff]   ;;  %v2841_v31 = vld [vmem:[%s3671_s29 + $0x124] ss:$8 sps:$4 sm:$0xff]  }
  0x4c   : > { %905 = vmatprep.subr.bf16.mxu0 %v2820_v29  ;;  %946 = vmatprep.subr.bf16.mxu1 %v2823_v23  ;;  %v2833_v23 = vld [vmem:[%s3671_s29 + $0x130] ss:$8 sps:$4 sm:$0xff]   ;;  %v2838_v29 = vld [vmem:[%s3671_s29 + $0x24] ss:$8 sps:$4 sm:$0xff]  }
  0x4f   : > { %906 = vmatpush1.bf16.msra.mxu0 %v2818_v21  ;;  %947 = vmatpush1.bf16.msra.mxu1 %v2821_v26  ;;  %v2836_v21 = vld [vmem:[%s3671_s29 + $0x20] ss:$8 sps:$4 sm:$0xff]  }
  0x50   : > { %907 = vmatprep.subr.bf16.mxu0 %v2826_v24  ;;  %948 = vmatprep.subr.bf16.mxu1 %v2829_v22  ;;  %v2839_v26 = vld [vmem:[%s3671_s29 + $0x120] ss:$8 sps:$4 sm:$0xff]   ;;  %v2844_v24 = vld [vmem:[%s3671_s29 + $0x14] ss:$8 sps:$4 sm:$0xff]  }
  0x51   : > { %v2847_v22 = vld [vmem:[%s3671_s29 + $0x114] ss:$8 sps:$4 sm:$0xff]  }
  0x53   : > { %908 = vmatpush1.bf16.msra.mxu0 %v2824_v20  ;;  %949 = vmatpush1.bf16.msra.mxu1 %v2827_v19  ;;  %v2842_v20 = vld [vmem:[%s3671_s29 + $0x10] ss:$8 sps:$4 sm:$0xff]  }
  0x54   : > { %909 = vmatprep.subr.bf16.mxu0 %v2832_v25  ;;  %950 = vmatprep.subr.bf16.mxu1 %v2835_v28  ;;  %v2845_v19 = vld [vmem:[%s3671_s29 + $0x110] ss:$8 sps:$4 sm:$0xff]   ;;  %v2850_v25 = vld [vmem:[%s3671_s29 + $0x4] ss:$8 sps:$4 sm:$0xff]  }
  0x55   : > { %v2853_v28 = vld [vmem:[%s3671_s29 + $0x104] ss:$8 sps:$4 sm:$0xff]  }
  0x57   : > { %910 = vmatpush1.bf16.msra.mxu0 %v2830_v30  ;;  %951 = vmatpush1.bf16.msra.mxu1 %v2833_v23  ;;  %v2848_v30 = vld [vmem:[%s3671_s29] ss:$8 sps:$4 sm:$0xff]  }
  0x58   : > { %911 = vmatprep.subr.bf16.mxu0 %v2838_v29  ;;  %952 = vmatprep.subr.bf16.mxu1 %v2841_v31  ;;  %v2851_v23 = vld [vmem:[%s3671_s29 + $0x100] ss:$8 sps:$4 sm:$0xff]   ;;  %v2859_v29 = vld [vmem:[%s3671_s29 + $0x1f4] ss:$8 sps:$4 sm:$0xff]   ;;  %v2854_v31 = vld [vmem:[%s3671_s29 + $0xf0] ss:$8 sps:$4 sm:$0xff]  }
  0x5b   : > { %912 = vmatpush1.bf16.msra.mxu0 %v2836_v21  ;;  %953 = vmatpush1.bf16.msra.mxu1 %v2839_v26  ;;  %v2857_v21 = vld [vmem:[%s3671_s29 + $0x1f0] ss:$8 sps:$4 sm:$0xff]   ;;  %v2862_v26 = vld [vmem:[%s3671_s29 + $0xe4] ss:$8 sps:$4 sm:$0xff]  }
  0x5c   : > { %913 = vmatprep.subr.bf16.mxu0 %v2844_v24  ;;  %954 = vmatprep.subr.bf16.mxu1 %v2847_v22  ;;  %v2865_v24 = vld [vmem:[%s3671_s29 + $0x1e4] ss:$8 sps:$4 sm:$0xff]   ;;  %v2860_v22 = vld [vmem:[%s3671_s29 + $0xe0] ss:$8 sps:$4 sm:$0xff]  }
  0x5f   : > { %914 = vmatpush1.bf16.msra.mxu0 %v2842_v20  ;;  %955 = vmatpush1.bf16.msra.mxu1 %v2845_v19  ;;  %v2868_v20 = vld [vmem:[%s3671_s29 + $0xd4] ss:$8 sps:$4 sm:$0xff]  }
  0x60   : > { %915 = vmatprep.subr.bf16.mxu0 %v2850_v25  ;;  %956 = vmatprep.subr.bf16.mxu1 %v2853_v28  ;;  %v2871_v19 = vld [vmem:[%s3671_s29 + $0x1d4] ss:$8 sps:$4 sm:$0xff]   ;;  %v2866_v25 = vld [vmem:[%s3671_s29 + $0xd0] ss:$8 sps:$4 sm:$0xff]  }
  0x61   : > { %v2869_v28 = vld [vmem:[%s3671_s29 + $0x1d0] ss:$8 sps:$4 sm:$0xff]  }
  0x63   : > { %916 = vmatpush1.bf16.msra.mxu0 %v2848_v30  ;;  %957 = vmatpush1.bf16.msra.mxu1 %v2851_v23  ;;  %v2874_v30 = vld [vmem:[%s3671_s29 + $0xc4] ss:$8 sps:$4 sm:$0xff]   ;;  %v2872_v23 = vld [vmem:[%s3671_s29 + $0xc0] ss:$8 sps:$4 sm:$0xff]  }
  0x64   : > { %917 = vmatprep.subr.bf16.mxu0 %v2856_v27  ;;  %958 = vmatprep.subr.bf16.mxu1 %v2859_v29  ;;  %v2877_v27 = vld [vmem:[%s3671_s29 + $0x1c4] ss:$8 sps:$4 sm:$0xff]   ;;  %v2875_v29 = vld [vmem:[%s3671_s29 + $0x1c0] ss:$8 sps:$4 sm:$0xff]  }
  0x67   : > { %918 = vmatpush2.bf16.msra.mxu0 %v2854_v31  ;;  %959 = vmatpush2.bf16.msra.mxu1 %v2857_v21  ;;  %v2880_v31 = vld [vmem:[%s3671_s29 + $0xb4] ss:$8 sps:$4 sm:$0xff]  }
  0x68   : > { %919 = vmatprep.subr.bf16.mxu0 %v2862_v26  ;;  %960 = vmatprep.subr.bf16.mxu1 %v2865_v24  ;;  %v2883_v21 = vld [vmem:[%s3671_s29 + $0x1b4] ss:$8 sps:$4 sm:$0xff]   ;;  %v2878_v26 = vld [vmem:[%s3671_s29 + $0xb0] ss:$8 sps:$4 sm:$0xff]  }
  0x69   : > { %v2881_v24 = vld [vmem:[%s3671_s29 + $0x1b0] ss:$8 sps:$4 sm:$0xff]  }
  0x6b   : > { %920 = vmatpush2.bf16.msra.mxu0 %v2860_v22  ;;  %961 = vmatpush2.bf16.msra.mxu1 %v2863_v18  ;;  %v2886_v22 = vld [vmem:[%s3671_s29 + $0xa4] ss:$8 sps:$4 sm:$0xff]  }
  0x6c   : > { %921 = vmatprep.subr.bf16.mxu0 %v2868_v20  ;;  %962 = vmatprep.subr.bf16.mxu1 %v2871_v19  ;;  %v2889_v18 = vld [vmem:[%s3671_s29 + $0x1a4] ss:$8 sps:$4 sm:$0xff]   ;;  %v2884_v20 = vld [vmem:[%s3671_s29 + $0xa0] ss:$8 sps:$4 sm:$0xff]  }
  0x6d   : > { %v2887_v19 = vld [vmem:[%s3671_s29 + $0x1a0] ss:$8 sps:$4 sm:$0xff]  }
  0x6f   : > { %922 = vmatpush2.bf16.msra.mxu0 %v2866_v25  ;;  %963 = vmatpush2.bf16.msra.mxu1 %v2869_v28  ;;  %v2895_v25 = vld [vmem:[%s3671_s29 + $0x194] ss:$8 sps:$4 sm:$0xff]   ;;  %v2890_v28 = vld [vmem:[%s3671_s29 + $0x90] ss:$8 sps:$4 sm:$0xff]  }
  0x70   : > { %923 = vmatprep.subr.bf16.mxu0 %v2874_v30  ;;  %964 = vmatprep.subr.bf16.mxu1 %v2877_v27  ;;  %v2893_v30 = vld [vmem:[%s3671_s29 + $0x190] ss:$8 sps:$4 sm:$0xff]   ;;  %v2898_v27 = vld [vmem:[%s3671_s29 + $0x84] ss:$8 sps:$4 sm:$0xff]  }
  0x73   : > { %924 = vmatpush2.bf16.msra.mxu0 %v2872_v23  ;;  %965 = vmatpush2.bf16.msra.mxu1 %v2875_v29  ;;  %v2901_v23 = vld [vmem:[%s3671_s29 + $0x184] ss:$8 sps:$4 sm:$0xff]   ;;  %v2896_v29 = vld [vmem:[%s3671_s29 + $0x80] ss:$8 sps:$4 sm:$0xff]  }
  0x74   : > { %925 = vmatprep.subr.bf16.mxu0 %v2880_v31  ;;  %966 = vmatprep.subr.bf16.mxu1 %v2883_v21  ;;  %v2899_v31 = vld [vmem:[%s3671_s29 + $0x180] ss:$8 sps:$4 sm:$0xff]  }
  0x75   : > { %v3903_v21 = vld [vmem:[%s4592_s0 + $0x1e8] sm:$0xff] }
  0x77   : > { %926 = vmatpush2.bf16.msra.mxu0 %v2878_v26  ;;  %967 = vmatpush2.bf16.msra.mxu1 %v2881_v24 }
  0x78   : > { %927 = vmatprep.subr.bf16.mxu0 %v2886_v22  ;;  %968 = vmatprep.subr.bf16.mxu1 %v2889_v18 }
  0x7b   : > { %928 = vmatpush2.bf16.msra.mxu0 %v2884_v20  ;;  %969 = vmatpush2.bf16.msra.mxu1 %v2887_v19 }
  0x7c   : > { %929 = vmatprep.subr.bf16.mxu0 %v2892_v17  ;;  %970 = vmatprep.subr.bf16.mxu1 %v2895_v25  ;;  %v3909_v17 = vld [vmem:[%s4592_s0 + $0x1f8] sm:$0xff] }
  0x7f   : > { %930 = vmatpush2.bf16.msra.mxu0 %v2890_v28  ;;  %971 = vmatpush2.bf16.msra.mxu1 %v2893_v30  ;;  %v3915_v30 = vld [vmem:[%s4592_s0 + $0x1e0] sm:$0xff] }
  0x80   : > { %931 = vmatprep.subr.bf16.mxu0 %v2898_v27  ;;  %972 = vmatprep.subr.bf16.mxu1 %v2901_v23  ;;  %v3921_v27 = vld [vmem:[%s4592_s0 + $0x1f0] sm:$0xff]  ;;  %v3927_v23 = vld [vmem:[%s4592_s0 + $0x1c8] sm:$0xff] }
  0x83   : > { %932 = vmatpush2.bf16.msra.mxu0 %v2896_v29  ;;  %973 = vmatpush2.bf16.msra.mxu1 %v2899_v31  ;;  %v3933_v29 = vld [vmem:[%s4592_s0 + $0x1d8] sm:$0xff]  ;;  %v3939_v31 = vld [vmem:[%s4592_s0 + $0x1c0] sm:$0xff] }
  0x84   : > { %1011 = vmatprep.subr.mxu0 %v3903_v21  ;;  %1082 = vmatprep.subr.mxu1 %v3909_v17 }
 0x105   : > { %v425_v26 = vpop.f32.mrf.mxu0  ;;  %v496_v24 = vpop.f32.mrf.mxu1 }
 0x106   : > { %v503_v22 = vpack.c.bf16 %v496_v24, %v496_v24  ;;  %v501_v28 = vpack.c.bf16 %v425_v26, %v425_v26  ;;  %v3945_v26 = vld [vmem:[%s4592_s0 + $0x1d0] sm:$0xff]  ;;  %v3951_v24 = vld [vmem:[%s4592_s0 + $0x1a8] sm:$0xff] }
 0x107   : > { %v427_v18 = vpop.f32.mrf.mxu0  ;;  %v498_v20 = vpop.f32.mrf.mxu1 }
 0x108   : > { %v502_v19 = vpack.c.bf16 %v427_v18, %v427_v18  ;;  %v504_v25 = vpack.c.bf16 %v498_v20, %v498_v20  ;;  %v3963_v18 = vld [vmem:[%s4592_s0 + $0x1a0] sm:$0xff]  ;;  %v3969_v20 = vld [vmem:[%s4592_s0 + $0x1b0] sm:$0xff] }
 0x109   : > { %4647 = vst [vmem:[#allocation20_spill] sm:$0xff] %v3969_v20 }
 0x10a   : > { %933 = vmatprep.mubr.bf16.mxu0 %v502_v19  ;;  %974 = vmatprep.mubr.bf16.mxu1 %v504_v25  ;;  %v3975_v19 = vld [vmem:[%s4592_s0 + $0x188] sm:$0xff]  ;;  %v3981_v25 = vld [vmem:[%s4592_s0 + $0x198] sm:$0xff] }
 0x10b   : > { %934 = vmatmul.mubr.bf16.vlgmr.msra.gmra.mxu0 %v501_v28  ;;  %975 = vmatmul.mubr.bf16.vlgmr.msra.gmra.mxu1 %v503_v22  ;;  %v3957_v22 = vld [vmem:[%s4592_s0 + $0x1b8] sm:$0xff]  ;;  %4648 = vst [vmem:[#allocation21_spill] sm:$0xff] %v3975_v19  ;;  %4649 = vst [vmem:[#allocation22_spill] sm:$0xff] %v3981_v25  ;;  %v3987_v28 = vld [vmem:[%s4592_s0 + $0x180] sm:$0xff] }
 0x10c   : > { %1012 = vmatpush1.msra.mxu0 %v3915_v30  ;;  %1083 = vmatpush1.msra.mxu1 %v3921_v27  ;;  %4650 = vst [vmem:[#allocation23_spill] sm:$0xff] %v3987_v28 }
 0x10d   : > { %1013 = vmatprep.subr.mxu0 %v3927_v23  ;;  %1084 = vmatprep.subr.mxu1 %v3933_v29 }
 0x10e   : > { %1014 = vmatpush1.msra.mxu0 %v3939_v31  ;;  %1085 = vmatpush1.msra.mxu1 %v3945_v26 }
 0x10f   : > { %1015 = vmatprep.subr.mxu0 %v3951_v24  ;;  %1086 = vmatprep.subr.mxu1 %v3957_v22 }
 0x110   : > { %1016 = vmatpush1.msra.mxu0 %v3963_v18  ;;  %1087 = vmatpush1.msra.mxu1 %v3969_v20  ;;  %v3993_v20 = vld [vmem:[%s4592_s0 + $0x190] sm:$0xff] }
 0x111   : > { %1017 = vmatprep.subr.mxu0 %v3975_v19  ;;  %1088 = vmatprep.subr.mxu1 %v3981_v25  ;;  %4651 = vst [vmem:[#allocation24_spill] sm:$0xff] %v3993_v20  ;;  %v3999_v19 = vld [vmem:[%s4592_s0 + $0x168] sm:$0xff]  ;;  %v4005_v25 = vld [vmem:[%s4592_s0 + $0x178] sm:$0xff] }
 0x112   : > { %1018 = vmatpush1.msra.mxu0 %v3987_v28  ;;  %1089 = vmatpush1.msra.mxu1 %v3993_v20  ;;  %4652 = vst [vmem:[#allocation25_spill] sm:$0xff] %v3999_v19  ;;  %4653 = vst [vmem:[#allocation26_spill] sm:$0xff] %v4005_v25  ;;  %v4011_v28 = vld [vmem:[%s4592_s0 + $0x160] sm:$0xff]  ;;  %v4017_v20 = vld [vmem:[%s4592_s0 + $0x170] sm:$0xff] }
 0x113   : > { %1019 = vmatprep.subr.mxu0 %v3999_v19  ;;  %1090 = vmatprep.subr.mxu1 %v4005_v25  ;;  %4654 = vst [vmem:[#allocation27_spill] sm:$0xff] %v4011_v28  ;;  %4655 = vst [vmem:[#allocation28_spill] sm:$0xff] %v4017_v20  ;;  %v4023_v19 = vld [vmem:[%s4592_s0 + $0x148] sm:$0xff]  ;;  %v4029_v25 = vld [vmem:[%s4592_s0 + $0x158] sm:$0xff] }
 0x114   : > { %1020 = vmatpush1.msra.mxu0 %v4011_v28  ;;  %1091 = vmatpush1.msra.mxu1 %v4017_v20  ;;  %4656 = vst [vmem:[#allocation29_spill] sm:$0xff] %v4023_v19  ;;  %4657 = vst [vmem:[#allocation30_spill] sm:$0xff] %v4029_v25  ;;  %v4035_v28 = vld [vmem:[%s4592_s0 + $0x140] sm:$0xff]  ;;  %v4041_v20 = vld [vmem:[%s4592_s0 + $0x150] sm:$0xff] }
 0x115   : > { %1021 = vmatprep.subr.mxu0 %v4023_v19  ;;  %1092 = vmatprep.subr.mxu1 %v4029_v25  ;;  %4658 = vst [vmem:[#allocation31_spill] sm:$0xff] %v4035_v28  ;;  %4659 = vst [vmem:[#allocation32_spill] sm:$0xff] %v4041_v20  ;;  %v4047_v19 = vld [vmem:[%s4592_s0 + $0x128] sm:$0xff]  ;;  %v4053_v25 = vld [vmem:[%s4592_s0 + $0x138] sm:$0xff] }
 0x116   : > { %1022 = vmatpush1.msra.mxu0 %v4035_v28  ;;  %1093 = vmatpush1.msra.mxu1 %v4041_v20  ;;  %4660 = vst [vmem:[#allocation33_spill] sm:$0xff] %v4047_v19  ;;  %4661 = vst [vmem:[#allocation34_spill] sm:$0xff] %v4053_v25  ;;  %v4059_v28 = vld [vmem:[%s4592_s0 + $0x120] sm:$0xff]  ;;  %v4065_v20 = vld [vmem:[%s4592_s0 + $0x130] sm:$0xff] }
 0x117   : > { %1023 = vmatprep.subr.mxu0 %v4047_v19  ;;  %1094 = vmatprep.subr.mxu1 %v4053_v25  ;;  %4662 = vst [vmem:[#allocation35_spill] sm:$0xff] %v4059_v28  ;;  %4663 = vst [vmem:[#allocation36_spill] sm:$0xff] %v4065_v20  ;;  %v4071_v19 = vld [vmem:[%s4592_s0 + $0x108] sm:$0xff]  ;;  %v4077_v25 = vld [vmem:[%s4592_s0 + $0x118] sm:$0xff] }
 0x118   : > { %1024 = vmatpush1.msra.mxu0 %v4059_v28  ;;  %1095 = vmatpush1.msra.mxu1 %v4065_v20  ;;  %v4083_v28 = vld [vmem:[%s4592_s0 + $0x100] sm:$0xff]  ;;  %v4089_v20 = vld [vmem:[%s4592_s0 + $0x110] sm:$0xff] }
 0x119   : > { %1025 = vmatprep.subr.mxu0 %v4071_v19  ;;  %1096 = vmatprep.subr.mxu1 %v4077_v25 }
 0x11a   : > { %1026 = vmatpush1.msra.mxu0 %v4083_v28  ;;  %1097 = vmatpush1.msra.mxu1 %v4089_v20 }
 0x11b   : > { %1027 = vmatprep.subr.mxu0 %v3427_v32  ;;  %1098 = vmatprep.subr.mxu1 %v3432_v33  ;;  %v2486_v32 = vld.sshfl [vmem:[%s3761_s6 + $0x4] sm:$0x33 pattern:$0x76325410]  ;;  %v4664_v33 = vld [vmem:[#allocation5_spill] sm:$0xff] }
 0x11c   : > { %1028 = vmatpush1.msra.mxu0 %v3437_v34  ;;  %1099 = vmatpush1.msra.mxu1 %v3442_v35  ;;  %v4665_v34 = vld [vmem:[#allocation6_spill] sm:$0xff]  ;;  %v4666_v35 = vld [vmem:[#allocation7_spill] sm:$0xff] }
 0x11d   : > { %1029 = vmatprep.subr.mxu0 %v3447_v36  ;;  %1100 = vmatprep.subr.mxu1 %v3452_v37  ;;  %v4667_v36 = vld [vmem:[#allocation8_spill] sm:$0xff]  ;;  %v4668_v37 = vld [vmem:[#allocation9_spill] sm:$0xff] }
 0x11e   : > { %1030 = vmatpush1.msra.mxu0 %v3459_v38  ;;  %1101 = vmatpush1.msra.mxu1 %v3464_v39  ;;  %v4669_v38 = vld [vmem:[#allocation10_spill] sm:$0xff]  ;;  %v4670_v39 = vld [vmem:[#allocation11_spill] sm:$0xff] }
 0x11f   : > { %1031 = vmatprep.subr.mxu0 %v3471_v40  ;;  %1102 = vmatprep.subr.mxu1 %v3476_v41  ;;  %v1007_v40 = vcombine.high %v2486_v32, %v2486_v32  ;;  %v4671_v41 = vld [vmem:[#allocation12_spill] sm:$0xff] }
 0x120   : > { %1032 = vmatpush1.msra.mxu0 %v3484_v42  ;;  %1103 = vmatpush1.msra.mxu1 %v3489_v43  ;;  %v4672_v42 = vld [vmem:[#allocation13_spill] sm:$0xff]  ;;  %v4673_v43 = vld [vmem:[#allocation14_spill] sm:$0xff] }
 0x121   : > { %1033 = vmatprep.subr.mxu0 %v3496_v44  ;;  %1104 = vmatprep.subr.mxu1 %v3501_v45  ;;  %v4674_v44 = vld [vmem:[#allocation15_spill] sm:$0xff]  ;;  %v4675_v45 = vld [vmem:[#allocation16_spill] sm:$0xff] }
 0x122   : > { %1034 = vmatpush1.msra.mxu0 %v3508_v46  ;;  %1105 = vmatpush1.msra.mxu1 %v3513_v47  ;;  %v4676_v46 = vld [vmem:[#allocation17_spill] sm:$0xff] }
 0x123   : > { %1035 = vmatprep.subr.mxu0 %v3520_v48  ;;  %1106 = vmatprep.subr.mxu1 %v3525_v49  ;;  %v2904_v47 = vld [vmem:[%s3671_s29 + $0x274] ss:$8 sps:$4 sm:$0xff]   ;;  %v4677_v49 = vld [vmem:[#allocation18_spill] sm:$0xff] }
 0x124   : > { %1036 = vmatpush1.msra.mxu0 %v3538_v50  ;;  %1107 = vmatpush1.msra.mxu1 %v3543_v51  ;;  %v2907_v48 = vld [vmem:[%s3671_s29 + $0x374] ss:$8 sps:$4 sm:$0xff]   ;;  %v2902_v50 = vld [vmem:[%s3671_s29 + $0x270] ss:$8 sps:$4 sm:$0xff]  }
 0x125   : > { %1037 = vmatprep.subr.mxu0 %v3550_v52  ;;  %1108 = vmatprep.subr.mxu1 %v3555_v53  ;;  %v2905_v51 = vld [vmem:[%s3671_s29 + $0x370] ss:$8 sps:$4 sm:$0xff]   ;;  %v4678_v52 = vld [vmem:[#allocation19_spill] sm:$0xff] }
 0x126   : > { %1038 = vmatpush1.msra.mxu0 %v3562_v54  ;;  %1109 = vmatpush1.msra.mxu1 %v3567_v55  ;;  %v2910_v53 = vld [vmem:[%s3671_s29 + $0x264] ss:$8 sps:$4 sm:$0xff]   ;;  %v2908_v55 = vld [vmem:[%s3671_s29 + $0x260] ss:$8 sps:$4 sm:$0xff]  }
 0x127   : > { %1039 = vmatprep.subr.mxu0 %v3574_v56  ;;  %1110 = vmatprep.subr.mxu1 %v3579_v57  ;;  %v2913_v54 = vld [vmem:[%s3671_s29 + $0x364] ss:$8 sps:$4 sm:$0xff]   ;;  %v2911_v56 = vld [vmem:[%s3671_s29 + $0x360] ss:$8 sps:$4 sm:$0xff]   ;;  %v2916_v57 = vld [vmem:[%s3671_s29 + $0x254] ss:$8 sps:$4 sm:$0xff]  }
 0x128   : > { %1040 = vmatpush1.msra.mxu0 %v3592_v58  ;;  %1111 = vmatpush1.msra.mxu1 %v3597_v59  ;;  %v2919_v58 = vld [vmem:[%s3671_s29 + $0x354] ss:$8 sps:$4 sm:$0xff]   ;;  %v2914_v59 = vld [vmem:[%s3671_s29 + $0x250] ss:$8 sps:$4 sm:$0xff]  }
 0x129   : > { %1041 = vmatprep.subr.mxu0 %v3604_v60  ;;  %1112 = vmatprep.subr.mxu1 %v3609_v61  ;;  %v2917_v60 = vld [vmem:[%s3671_s29 + $0x350] ss:$8 sps:$4 sm:$0xff]   ;;  %v2922_v61 = vld [vmem:[%s3671_s29 + $0x244] ss:$8 sps:$4 sm:$0xff]  }
 0x12a   : > { %1042 = vmatpush1.msra.mxu0 %v3614_v62  ;;  %1113 = vmatpush1.msra.mxu1 %v3622_v63  ;;  %v2925_v62 = vld [vmem:[%s3671_s29 + $0x344] ss:$8 sps:$4 sm:$0xff]   ;;  %v2920_v63 = vld [vmem:[%s3671_s29 + $0x240] ss:$8 sps:$4 sm:$0xff]  }
 0x12b   : > { %1059 = vmatprep.subr.mxu0 %v3627_v0  ;;  %1130 = vmatprep.subr.mxu1 %v3632_v1  ;;  %v2923_v0 = vld [vmem:[%s3671_s29 + $0x340] ss:$8 sps:$4 sm:$0xff]   ;;  %v2928_v1 = vld [vmem:[%s3671_s29 + $0x234] ss:$8 sps:$4 sm:$0xff]  }
 0x12c   : > { %1060 = vmatpush2.msra.mxu0 %v3639_v2  ;;  %1131 = vmatpush2.msra.mxu1 %v3644_v3  ;;  %v2931_v2 = vld [vmem:[%s3671_s29 + $0x334] ss:$8 sps:$4 sm:$0xff]   ;;  %v2926_v3 = vld [vmem:[%s3671_s29 + $0x230] ss:$8 sps:$4 sm:$0xff]  }
 0x12d   : > { %1061 = vmatprep.subr.mxu0 %v3649_v4  ;;  %1132 = vmatprep.subr.mxu1 %v3656_v5  ;;  %v2929_v4 = vld [vmem:[%s3671_s29 + $0x330] ss:$8 sps:$4 sm:$0xff]   ;;  %v2934_v5 = vld [vmem:[%s3671_s29 + $0x224] ss:$8 sps:$4 sm:$0xff]  }
 0x12e   : > { %1062 = vmatpush2.msra.mxu0 %v3661_v6  ;;  %1133 = vmatpush2.msra.mxu1 %v3666_v7  ;;  %v2937_v6 = vld [vmem:[%s3671_s29 + $0x324] ss:$8 sps:$4 sm:$0xff]   ;;  %v2932_v7 = vld [vmem:[%s3671_s29 + $0x220] ss:$8 sps:$4 sm:$0xff]  }
 0x12f   : > { %1063 = vmatprep.subr.mxu0 %v3678_v8  ;;  %1134 = vmatprep.subr.mxu1 %v3683_v9  ;;  %v2935_v8 = vld [vmem:[%s3671_s29 + $0x320] ss:$8 sps:$4 sm:$0xff]   ;;  %v2938_v9 = vld [vmem:[%s3671_s29 + $0x210] ss:$8 sps:$4 sm:$0xff]  }
 0x130   : > { %1064 = vmatpush2.msra.mxu0 %v3690_v10  ;;  %1135 = vmatpush2.msra.mxu1 %v3695_v11  ;;  %v2940_v10 = vld [vmem:[%s3671_s29 + $0x214] ss:$8 sps:$4 sm:$0xff]   ;;  %v2941_v11 = vld [vmem:[%s3671_s29 + $0x310] ss:$8 sps:$4 sm:$0xff]  }
 0x131   : > { %1065 = vmatprep.subr.mxu0 %v3702_v12  ;;  %1136 = vmatprep.subr.mxu1 %v3707_v13  ;;  %v2943_v12 = vld [vmem:[%s3671_s29 + $0x314] ss:$8 sps:$4 sm:$0xff]   ;;  %v2946_v13 = vld [vmem:[%s3671_s29 + $0x204] ss:$8 sps:$4 sm:$0xff]  }
 0x132   : > { %1066 = vmatpush2.msra.mxu0 %v3714_v14  ;;  %1137 = vmatpush2.msra.mxu1 %v3719_v15  ;;  %v2949_v14 = vld [vmem:[%s3671_s29 + $0x304] ss:$8 sps:$4 sm:$0xff]   ;;  %v2944_v15 = vld [vmem:[%s3671_s29 + $0x200] ss:$8 sps:$4 sm:$0xff]  }
 0x133   : > { %1067 = vmatprep.subr.mxu0 %v3727_v16  ;;  %1138 = vmatprep.subr.mxu1 %v4664_v33  ;;  %v2947_v16 = vld [vmem:[%s3671_s29 + $0x300] ss:$8 sps:$4 sm:$0xff]   ;;  %v2955_v33 = vld [vmem:[%s3671_s29 + $0x3f4] ss:$8 sps:$4 sm:$0xff]  }
 0x134   : > { %1068 = vmatpush2.msra.mxu0 %v4665_v34  ;;  %1139 = vmatpush2.msra.mxu1 %v4666_v35  ;;  %v2950_v34 = vld [vmem:[%s3671_s29 + $0x2f0] ss:$8 sps:$4 sm:$0xff]  }
 0x135   : > { %1069 = vmatprep.subr.mxu0 %v4667_v36  ;;  %1140 = vmatprep.subr.mxu1 %v4668_v37  ;;  %v2953_v35 = vld [vmem:[%s3671_s29 + $0x3f0] ss:$8 sps:$4 sm:$0xff]   ;;  %v2958_v36 = vld [vmem:[%s3671_s29 + $0x2e4] ss:$8 sps:$4 sm:$0xff]  }
 0x136   : > { %1070 = vmatpush2.msra.mxu0 %v4669_v38  ;;  %1141 = vmatpush2.msra.mxu1 %v4670_v39  ;;  %v2961_v37 = vld [vmem:[%s3671_s29 + $0x3e4] ss:$8 sps:$4 sm:$0xff]   ;;  %v2956_v38 = vld [vmem:[%s3671_s29 + $0x2e0] ss:$8 sps:$4 sm:$0xff]  }
 0x137   : > { %1071 = vmatprep.subr.mxu0 %v4671_v41  ;;  %1142 = vmatprep.subr.mxu1 %v4672_v42  ;;  %v2959_v39 = vld [vmem:[%s3671_s29 + $0x3e0] ss:$8 sps:$4 sm:$0xff]   ;;  %v2967_v41 = vld [vmem:[%s3671_s29 + $0x3d4] ss:$8 sps:$4 sm:$0xff]   ;;  %v2962_v42 = vld [vmem:[%s3671_s29 + $0x2d0] ss:$8 sps:$4 sm:$0xff]  }
 0x138   : > { %1072 = vmatpush2.msra.mxu0 %v4673_v43  ;;  %1143 = vmatpush2.msra.mxu1 %v4674_v44  ;;  %v2965_v43 = vld [vmem:[%s3671_s29 + $0x3d0] ss:$8 sps:$4 sm:$0xff]   ;;  %v2970_v44 = vld [vmem:[%s3671_s29 + $0x2c4] ss:$8 sps:$4 sm:$0xff]  }
 0x139   : > { %1073 = vmatprep.subr.mxu0 %v4675_v45  ;;  %1144 = vmatprep.subr.mxu1 %v4676_v46  ;;  %v2973_v45 = vld [vmem:[%s3671_s29 + $0x3c4] ss:$8 sps:$4 sm:$0xff]   ;;  %v2968_v46 = vld [vmem:[%s3671_s29 + $0x2c0] ss:$8 sps:$4 sm:$0xff]  }
 0x13a   : > { %1074 = vmatpush2.msra.mxu0 %v4677_v49  ;;  %2487 = vmatprep.mubr.msk.f32.mxu0 %vm356_vm0, %v1007_v40  ;;  %v2979_v49 = vld [vmem:[%s3671_s29 + $0x3b4] ss:$8 sps:$4 sm:$0xff]  }
 0x13b   : > { %1145 = vmatpush2.msra.mxu1 %v4678_v52  ;;  %2488 = vmatprep.mubr.msk.f32.mxu1 %vm356_vm0, %v1007_v40  ;;  %v2964_v40 = vld [vmem:[%s3671_s29 + $0x2d4] ss:$8 sps:$4 sm:$0xff]   ;;  %v2982_v52 = vld [vmem:[%s3671_s29 + $0x2a4] ss:$8 sps:$4 sm:$0xff]  }
 0x13c   : > { %1076 = vmatmul.mubr.f32.vlgmr.msra.gmra.mxu0 %v2486_v32  ;;  %1147 = vmatmul.mubr.f32.vlgmr.msra.gmra.mxu1 %v2486_v32  ;;  %v2952_v32 = vld [vmem:[%s3671_s29 + $0x2f4] ss:$8 sps:$4 sm:$0xff]  }
 0x13d   : > { %1555 = vmatprep.subr.bf16.mxu0 %v2904_v47  ;;  %1596 = vmatprep.subr.bf16.mxu1 %v2907_v48  ;;  %v2971_v47 = vld [vmem:[%s3671_s29 + $0x3c0] ss:$8 sps:$4 sm:$0xff]   ;;  %v2976_v48 = vld [vmem:[%s3671_s29 + $0x2b4] ss:$8 sps:$4 sm:$0xff]  }
 0x13e   : > { %1556 = vmatpush1.bf16.msra.mxu0 %v2902_v50  ;;  %1597 = vmatpush1.bf16.msra.mxu1 %v2905_v51  ;;  %v2974_v50 = vld [vmem:[%s3671_s29 + $0x2b0] ss:$8 sps:$4 sm:$0xff]  }
 0x13f   : > { %1557 = vmatprep.subr.bf16.mxu0 %v2910_v53  ;;  %1598 = vmatprep.subr.bf16.mxu1 %v2913_v54  ;;  %v2977_v51 = vld [vmem:[%s3671_s29 + $0x3b0] ss:$8 sps:$4 sm:$0xff]   ;;  %v2985_v53 = vld [vmem:[%s3671_s29 + $0x3a4] ss:$8 sps:$4 sm:$0xff]   ;;  %v2980_v54 = vld [vmem:[%s3671_s29 + $0x2a0] ss:$8 sps:$4 sm:$0xff]  }
 0x142   : > { %1558 = vmatpush1.bf16.msra.mxu0 %v2908_v55  ;;  %1599 = vmatpush1.bf16.msra.mxu1 %v2911_v56  ;;  %v2983_v55 = vld [vmem:[%s3671_s29 + $0x3a0] ss:$8 sps:$4 sm:$0xff]   ;;  %v2988_v56 = vld [vmem:[%s3671_s29 + $0x294] ss:$8 sps:$4 sm:$0xff]  }
 0x143   : > { %1559 = vmatprep.subr.bf16.mxu0 %v2916_v57  ;;  %1600 = vmatprep.subr.bf16.mxu1 %v2919_v58  ;;  %v2991_v57 = vld [vmem:[%s3671_s29 + $0x394] ss:$8 sps:$4 sm:$0xff]   ;;  %v2986_v58 = vld [vmem:[%s3671_s29 + $0x290] ss:$8 sps:$4 sm:$0xff]  }
 0x146   : > { %1560 = vmatpush1.bf16.msra.mxu0 %v2914_v59  ;;  %1601 = vmatpush1.bf16.msra.mxu1 %v2917_v60  ;;  %v2989_v59 = vld [vmem:[%s3671_s29 + $0x390] ss:$8 sps:$4 sm:$0xff]   ;;  %v2994_v60 = vld [vmem:[%s3671_s29 + $0x284] ss:$8 sps:$4 sm:$0xff]  }
 0x147   : > { %1561 = vmatprep.subr.bf16.mxu0 %v2922_v61  ;;  %1602 = vmatprep.subr.bf16.mxu1 %v2925_v62  ;;  %v2997_v61 = vld [vmem:[%s3671_s29 + $0x384] ss:$8 sps:$4 sm:$0xff]   ;;  %v2992_v62 = vld [vmem:[%s3671_s29 + $0x280] ss:$8 sps:$4 sm:$0xff]  }
 0x14a   : > { %1562 = vmatpush1.bf16.msra.mxu0 %v2920_v63  ;;  %1603 = vmatpush1.bf16.msra.mxu1 %v2923_v0  ;;  %v2995_v63 = vld [vmem:[%s3671_s29 + $0x380] ss:$8 sps:$4 sm:$0xff]   ;;  %v571_v0 = vlaneseq }
 0x14b   : > { %1563 = vmatprep.subr.bf16.mxu0 %v2928_v1  ;;  %1604 = vmatprep.subr.bf16.mxu1 %v2931_v2 }
 0x14c   : > { %v572_v1 = vshrl.u32 %v571_v0, 7  ;;  %v3143_v0 = vld [vmem:[%s4592_s0 + $0x78] sm:$0xff] }
 0x14e   : > { %1564 = vmatpush1.bf16.msra.mxu0 %v2926_v3  ;;  %1605 = vmatpush1.bf16.msra.mxu1 %v2929_v4  ;;  %v4231_v2 = vsub.s32 0, %v572_v1  ;;  %v569_v3 = vld [vmem:[%s4229_s8] sm:$0x3]  ;;  %v4234_v4 = vsub.s32 1, %v572_v1 }
 0x14f   : > { %1565 = vmatprep.subr.bf16.mxu0 %v2934_v5  ;;  %1606 = vmatprep.subr.bf16.mxu1 %v2937_v6  ;;  %v3144_v1 = vld [vmem:[%s4592_s0 + $0x60] sm:$0xff] }
 0x150   : > { %v574_v5 = vrot.slane %v569_v3, %v4231_v2 }
 0x152   : > { %1566 = vmatpush1.bf16.msra.mxu0 %v2932_v7  ;;  %1607 = vmatpush1.bf16.msra.mxu1 %v2935_v8 }
 0x153   : > { %1567 = vmatprep.subr.bf16.mxu0 %v2940_v10  ;;  %1608 = vmatprep.subr.bf16.mxu1 %v2943_v12 }
 0x156   : > { %1568 = vmatpush1.bf16.msra.mxu0 %v2938_v9  ;;  %1609 = vmatpush1.bf16.msra.mxu1 %v2941_v11 }
 0x157   : > { %1569 = vmatprep.subr.bf16.mxu0 %v2946_v13  ;;  %1610 = vmatprep.subr.bf16.mxu1 %v2949_v14 }
 0x15a   : > { %1570 = vmatpush1.bf16.msra.mxu0 %v2944_v15  ;;  %1611 = vmatpush1.bf16.msra.mxu1 %v2947_v16 }
 0x15b   : > { %1571 = vmatprep.subr.bf16.mxu0 %v2952_v32  ;;  %1612 = vmatprep.subr.bf16.mxu1 %v2955_v33 }
 0x15e   : > { %1572 = vmatpush2.bf16.msra.mxu0 %v2950_v34  ;;  %1613 = vmatpush2.bf16.msra.mxu1 %v2953_v35 }
 0x15f   : > { %1573 = vmatprep.subr.bf16.mxu0 %v2958_v36  ;;  %1614 = vmatprep.subr.bf16.mxu1 %v2961_v37 }
 0x162   : > { %1574 = vmatpush2.bf16.msra.mxu0 %v2956_v38  ;;  %1615 = vmatpush2.bf16.msra.mxu1 %v2959_v39 }
 0x163   : > { %1575 = vmatprep.subr.bf16.mxu0 %v2964_v40  ;;  %1616 = vmatprep.subr.bf16.mxu1 %v2967_v41 }
 0x166   : > { %1576 = vmatpush2.bf16.msra.mxu0 %v2962_v42  ;;  %1617 = vmatpush2.bf16.msra.mxu1 %v2965_v43  ;;  %v4679_v43 = vld [vmem:[#allocation20_spill] sm:$0xff] }
 0x167   : > { %1577 = vmatprep.subr.bf16.mxu0 %v2970_v44  ;;  %1618 = vmatprep.subr.bf16.mxu1 %v2973_v45  ;;  %v4680_v44 = vld [vmem:[#allocation21_spill] sm:$0xff]  ;;  %v4690_v45 = vld [vmem:[#allocation31_spill] sm:$0xff] }
 0x16a   : > { %1578 = vmatpush2.bf16.msra.mxu0 %v2968_v46  ;;  %1619 = vmatpush2.bf16.msra.mxu1 %v2971_v47  ;;  %v4691_v46 = vld [vmem:[#allocation32_spill] sm:$0xff]  ;;  %v4692_v47 = vld [vmem:[#allocation33_spill] sm:$0xff] }
 0x16b   : > { %1579 = vmatprep.subr.bf16.mxu0 %v2976_v48  ;;  %1620 = vmatprep.subr.bf16.mxu1 %v2979_v49  ;;  %v4693_v48 = vld [vmem:[#allocation34_spill] sm:$0xff]  ;;  %v4694_v49 = vld [vmem:[#allocation35_spill] sm:$0xff] }
 0x16e   : > { %1580 = vmatpush2.bf16.msra.mxu0 %v2974_v50  ;;  %1621 = vmatpush2.bf16.msra.mxu1 %v2977_v51  ;;  %v4695_v50 = vld [vmem:[#allocation36_spill] sm:$0xff]  ;;  %v3126_v51 = vld [vmem:[%s4592_s0 + $0xe8] sm:$0xff] }
 0x16f   : > { %1581 = vmatprep.subr.bf16.mxu0 %v2982_v52  ;;  %1622 = vmatprep.subr.bf16.mxu1 %v2985_v53  ;;  %v3127_v52 = vld [vmem:[%s4592_s0 + $0xf8] sm:$0xff]  ;;  %v3132_v53 = vld [vmem:[%s4592_s0 + $0xc0] sm:$0xff] }
 0x172   : > { %1582 = vmatpush2.bf16.msra.mxu0 %v2980_v54  ;;  %1623 = vmatpush2.bf16.msra.mxu1 %v2983_v55  ;;  %v3133_v54 = vld [vmem:[%s4592_s0 + $0xd0] sm:$0xff]  ;;  %v3134_v55 = vld [vmem:[%s4592_s0 + $0xa8] sm:$0xff] }
 0x173   : > { %1583 = vmatprep.subr.bf16.mxu0 %v2988_v56  ;;  %1624 = vmatprep.subr.bf16.mxu1 %v2991_v57  ;;  %v3135_v56 = vld [vmem:[%s4592_s0 + $0xb8] sm:$0xff]  ;;  %v3136_v57 = vld [vmem:[%s4592_s0 + $0xa0] sm:$0xff] }
 0x176   : > { %1584 = vmatpush2.bf16.msra.mxu0 %v2986_v58  ;;  %1625 = vmatpush2.bf16.msra.mxu1 %v2989_v59  ;;  %v3137_v58 = vld [vmem:[%s4592_s0 + $0xb0] sm:$0xff]  ;;  %v3138_v59 = vld [vmem:[%s4592_s0 + $0x88] sm:$0xff] }
 0x177   : > { %1585 = vmatprep.subr.bf16.mxu0 %v2994_v60  ;;  %1626 = vmatprep.subr.bf16.mxu1 %v2997_v61  ;;  %v3139_v60 = vld [vmem:[%s4592_s0 + $0x98] sm:$0xff]  ;;  %v3140_v61 = vld [vmem:[%s4592_s0 + $0x80] sm:$0xff] }
 0x17a   : > { %1586 = vmatpush2.bf16.msra.mxu0 %v2992_v62  ;;  %1627 = vmatpush2.bf16.msra.mxu1 %v2995_v63  ;;  %v3141_v62 = vld [vmem:[%s4592_s0 + $0x90] sm:$0xff]  ;;  %v3142_v63 = vld [vmem:[%s4592_s0 + $0x68] sm:$0xff] }
 0x17b   : > { %1666 = vmatprep.subr.mxu0 %v3903_v21  ;;  %1737 = vmatprep.subr.mxu1 %v3909_v17  ;;  %v578_v21 = vrot.slane %v569_v3, %v4234_v4  ;;  %v3145_v3 = vld [vmem:[%s4592_s0 + $0x70] sm:$0xff] }
 0x1cb   : > { %v935_v17 = vpop.f32.mrf.mxu0  ;;  %v976_v6 = vpop.f32.mrf.mxu1 }
 0x1cc   : > { %v936_v7 = vadd.f32 %v935_v17, %v574_v5  ;;  %v3146_v5 = vld [vmem:[%s4592_s0 + $0x48] sm:$0xff]  ;;  %v3148_v17 = vld [vmem:[%s4592_s0 + $0x40] sm:$0xff] }
 0x1cd   : > { %v937_v8 = vpop.f32.mrf.mxu0  ;;  %v978_v9 = vpop.f32.mrf.mxu1 }
 0x1ce   : > { %v977_v10 = vadd.f32 %v976_v6, %v936_v7  ;;  %v938_v11 = vadd.f32 %v937_v8, %v578_v21  ;;  %v3147_v21 = vld [vmem:[%s4592_s0 + $0x58] sm:$0xff]  ;;  %v3149_v6 = vld [vmem:[%s4592_s0 + $0x50] sm:$0xff]  ;;  %v3150_v7 = vld [vmem:[%s4592_s0 + $0x28] sm:$0xff] }
 0x1cf   : > { %v939_v12 = vpop.f32.mrf.mxu0  ;;  %v980_v13 = vpop.f32.mrf.mxu1  ;;  %v3151_v8 = vld [vmem:[%s4592_s0 + $0x38] sm:$0xff] }
 0x1d0   : > { %v979_v14 = vadd.f32 %v978_v9, %v938_v11  ;;  %v983_v32 = vmax.f32 %v977_v10, 0.0  ;;  %v3152_v9 = vld [vmem:[%s4592_s0 + $0x20] sm:$0xff]  ;;  %v3153_v10 = vld [vmem:[%s4592_s0 + $0x30] sm:$0xff]  ;;  %v3154_v11 = vld [vmem:[%s4592_s0 + $0x8] sm:$0xff] }
 0x1d1   : > { %v940_v15 = vpop.f32.mrf.mxu0  ;;  %v981_v16 = vpop.f32.mrf.mxu1  ;;  %v3155_v12 = vld [vmem:[%s4592_s0 + $0x18] sm:$0xff]  ;;  %v3156_v13 = vld [vmem:[%s4592_s0] sm:$0xff] }
 0x1d2   : > { %v984_v33 = vmax.f32 %v979_v14, 0.0  ;;  %v3157_v14 = vld [vmem:[%s4592_s0 + $0x10] sm:$0xff]  ;;  %v3158_v15 = vld [vmem:[%s4592_s0 + $0x2e8] sm:$0xff]  ;;  %v3159_v16 = vld [vmem:[%s4592_s0 + $0x2f8] sm:$0xff] }
 0x1d4   : > { %v987_v34 = vcombine.low %v983_v32, %v984_v33  ;;  %v3160_v32 = vld [vmem:[%s4592_s0 + $0x2e0] sm:$0xff]  ;;  %v3161_v33 = vld [vmem:[%s4592_s0 + $0x2f0] sm:$0xff] }
 0x1d6   : > { %2484 = vst.sshfl [vmem:[%s4241_s9] sm:$0x33 pattern:$0x76325410] %v987_v34  ;;  %v3162_v34 = vld [vmem:[%s4592_s0 + $0x2c8] sm:$0xff] }
 0x1fc   : > { %v1077_v35 = vpop.f32.mrf.mxu0  ;;  %v1148_v36 = vpop.f32.mrf.mxu1 }
 0x1fd   : > { %v1155_v37 = vpack.c.bf16 %v1148_v36, %v1148_v36  ;;  %v1153_v42 = vpack.c.bf16 %v1077_v35, %v1077_v35  ;;  %v3163_v35 = vld [vmem:[%s4592_s0 + $0x2d8] sm:$0xff]  ;;  %v3164_v36 = vld [vmem:[%s4592_s0 + $0x2c0] sm:$0xff] }
 0x1fe   : > { %v1079_v38 = vpop.f32.mrf.mxu0  ;;  %v1150_v39 = vpop.f32.mrf.mxu1 }
 0x1ff   : > { %v1154_v40 = vpack.c.bf16 %v1079_v38, %v1079_v38  ;;  %v1156_v41 = vpack.c.bf16 %v1150_v39, %v1150_v39  ;;  %v3166_v38 = vld [vmem:[%s4592_s0 + $0x2a8] sm:$0xff]  ;;  %v3167_v39 = vld [vmem:[%s4592_s0 + $0x2b8] sm:$0xff] }
 0x201   : > { %1587 = vmatprep.mubr.bf16.mxu0 %v1154_v40  ;;  %1628 = vmatprep.mubr.bf16.mxu1 %v1156_v41  ;;  %v3168_v40 = vld [vmem:[%s4592_s0 + $0x2a0] sm:$0xff]  ;;  %v3169_v41 = vld [vmem:[%s4592_s0 + $0x2b0] sm:$0xff] }
 0x202   : > { %1588 = vmatmul.mubr.bf16.vlgmr.msra.gmra.mxu0 %v1153_v42  ;;  %1629 = vmatmul.mubr.bf16.vlgmr.msra.gmra.mxu1 %v1155_v37  ;;  %v3165_v37 = vld [vmem:[%s4592_s0 + $0x2d0] sm:$0xff]  ;;  %v3170_v42 = vld [vmem:[%s4592_s0 + $0x288] sm:$0xff] }
 0x203   : > { %1667 = vmatpush1.msra.mxu0 %v3915_v30  ;;  %1738 = vmatpush1.msra.mxu1 %v3921_v27  ;;  %v4681_v30 = vld [vmem:[#allocation22_spill] sm:$0xff]  ;;  %v4682_v27 = vld [vmem:[#allocation23_spill] sm:$0xff] }
 0x204   : > { %1668 = vmatprep.subr.mxu0 %v3927_v23  ;;  %1739 = vmatprep.subr.mxu1 %v3933_v29  ;;  %v4683_v23 = vld [vmem:[#allocation24_spill] sm:$0xff]  ;;  %v4684_v29 = vld [vmem:[#allocation25_spill] sm:$0xff] }
 0x205   : > { %1669 = vmatpush1.msra.mxu0 %v3939_v31  ;;  %1740 = vmatpush1.msra.mxu1 %v3945_v26  ;;  %v4685_v31 = vld [vmem:[#allocation26_spill] sm:$0xff]  ;;  %v4686_v26 = vld [vmem:[#allocation27_spill] sm:$0xff] }
 0x206   : > { %1670 = vmatprep.subr.mxu0 %v3951_v24  ;;  %1741 = vmatprep.subr.mxu1 %v3957_v22  ;;  %v4687_v24 = vld [vmem:[#allocation28_spill] sm:$0xff]  ;;  %v4688_v22 = vld [vmem:[#allocation29_spill] sm:$0xff] }
 0x207   : > { %1671 = vmatpush1.msra.mxu0 %v3963_v18  ;;  %1742 = vmatpush1.msra.mxu1 %v4679_v43  ;;  %v4689_v18 = vld [vmem:[#allocation30_spill] sm:$0xff]  ;;  %v3171_v43 = vld [vmem:[%s4592_s0 + $0x298] sm:$0xff] }
 0x208   : > { %1672 = vmatprep.subr.mxu0 %v4680_v44  ;;  %1743 = vmatprep.subr.mxu1 %v4681_v30  ;;  %v3172_v44 = vld [vmem:[%s4592_s0 + $0x280] sm:$0xff]  ;;  %v3173_v30 = vld [vmem:[%s4592_s0 + $0x290] sm:$0xff] }
 0x209   : > { %1673 = vmatpush1.msra.mxu0 %v4682_v27  ;;  %1744 = vmatpush1.msra.mxu1 %v4683_v23  ;;  %v2620_v27 = vld.sshfl [vmem:[%s3761_s6 + $0x8] sm:$0x33 pattern:$0x76325410] }
 0x20a   : > { %1674 = vmatprep.subr.mxu0 %v4684_v29  ;;  %1745 = vmatprep.subr.mxu1 %v4685_v31  ;;  %v3174_v23 = vld [vmem:[%s4592_s0 + $0x268] sm:$0xff]  ;;  %v3175_v29 = vld [vmem:[%s4592_s0 + $0x278] sm:$0xff]  ;;  %v3176_v31 = vld [vmem:[%s4592_s0 + $0x260] sm:$0xff] }
 0x20b   : > { %1675 = vmatpush1.msra.mxu0 %v4686_v26  ;;  %1746 = vmatpush1.msra.mxu1 %v4687_v24  ;;  %v3177_v26 = vld [vmem:[%s4592_s0 + $0x270] sm:$0xff]  ;;  %v3178_v24 = vld [vmem:[%s4592_s0 + $0x248] sm:$0xff] }
 0x20c   : > { %1676 = vmatprep.subr.mxu0 %v4688_v22  ;;  %1747 = vmatprep.subr.mxu1 %v4689_v18  ;;  %v3179_v22 = vld [vmem:[%s4592_s0 + $0x258] sm:$0xff]  ;;  %v3180_v18 = vld [vmem:[%s4592_s0 + $0x240] sm:$0xff] }
 0x20d   : > { %1677 = vmatpush1.msra.mxu0 %v4690_v45  ;;  %1748 = vmatpush1.msra.mxu1 %v4691_v46  ;;  %v3181_v45 = vld [vmem:[%s4592_s0 + $0x250] sm:$0xff]  ;;  %v1662_v46 = vcombine.high %v2620_v27, %v2620_v27 }
 0x20e   : > { %1678 = vmatprep.subr.mxu0 %v4692_v47  ;;  %1749 = vmatprep.subr.mxu1 %v4693_v48  ;;  %v3182_v47 = vld [vmem:[%s4592_s0 + $0x228] sm:$0xff]  ;;  %v3183_v48 = vld [vmem:[%s4592_s0 + $0x238] sm:$0xff] }
 0x20f   : > { %1679 = vmatpush1.msra.mxu0 %v4694_v49  ;;  %1750 = vmatpush1.msra.mxu1 %v4695_v50  ;;  %v3184_v49 = vld [vmem:[%s4592_s0 + $0x220] sm:$0xff]  ;;  %v3185_v50 = vld [vmem:[%s4592_s0 + $0x230] sm:$0xff] }
 0x210   : > { %1680 = vmatprep.subr.mxu0 %v4071_v19  ;;  %1751 = vmatprep.subr.mxu1 %v4077_v25  ;;  %v3128_v19 = vld [vmem:[%s4592_s0 + $0xe0] sm:$0xff]  ;;  %v3129_v25 = vld [vmem:[%s4592_s0 + $0xf0] sm:$0xff] }
 0x211   : > { %1681 = vmatpush1.msra.mxu0 %v4083_v28  ;;  %1752 = vmatpush1.msra.mxu1 %v4089_v20  ;;  %v3130_v20 = vld [vmem:[%s4592_s0 + $0xc8] sm:$0xff]  ;;  %v3131_v28 = vld [vmem:[%s4592_s0 + $0xd8] sm:$0xff] }
 0x212   : > { %1682 = vmatprep.subr.mxu0 %v3126_v51  ;;  %1753 = vmatprep.subr.mxu1 %v3127_v52  ;;  %v3186_v51 = vld [vmem:[%s4592_s0 + $0x208] sm:$0xff]  ;;  %v3187_v52 = vld [vmem:[%s4592_s0 + $0x218] sm:$0xff] }
 0x213   : > { %1683 = vmatpush1.msra.mxu0 %v3128_v19  ;;  %1754 = vmatpush1.msra.mxu1 %v3129_v25  ;;  %v3000_v19 = vld [vmem:[%s3671_s29 + $0x474] ss:$8 sps:$4 sm:$0xff]  }
 0x214   : > { %1684 = vmatprep.subr.mxu0 %v3130_v20  ;;  %1755 = vmatprep.subr.mxu1 %v3131_v28  ;;  %v3003_v25 = vld [vmem:[%s3671_s29 + $0x574] ss:$8 sps:$4 sm:$0xff]   ;;  %v3188_v20 = vld [vmem:[%s4592_s0 + $0x200] sm:$0xff]  ;;  %v2998_v28 = vld [vmem:[%s3671_s29 + $0x470] ss:$8 sps:$4 sm:$0xff]  }
 0x215   : > { %1685 = vmatpush1.msra.mxu0 %v3132_v53  ;;  %1756 = vmatpush1.msra.mxu1 %v3133_v54  ;;  %v3001_v53 = vld [vmem:[%s3671_s29 + $0x570] ss:$8 sps:$4 sm:$0xff]  }
 0x216   : > { %1686 = vmatprep.subr.mxu0 %v3134_v55  ;;  %1757 = vmatprep.subr.mxu1 %v3135_v56  ;;  %v3189_v54 = vld [vmem:[%s4592_s0 + $0x210] sm:$0xff]  ;;  %v3006_v55 = vld [vmem:[%s3671_s29 + $0x464] ss:$8 sps:$4 sm:$0xff]  }
 0x217   : > { %1687 = vmatpush1.msra.mxu0 %v3136_v57  ;;  %1758 = vmatpush1.msra.mxu1 %v3137_v58  ;;  %v3009_v56 = vld [vmem:[%s3671_s29 + $0x564] ss:$8 sps:$4 sm:$0xff]   ;;  %v3004_v57 = vld [vmem:[%s3671_s29 + $0x460] ss:$8 sps:$4 sm:$0xff]  }
 0x218   : > { %1688 = vmatprep.subr.mxu0 %v3138_v59  ;;  %1759 = vmatprep.subr.mxu1 %v3139_v60  ;;  %v3007_v58 = vld [vmem:[%s3671_s29 + $0x560] ss:$8 sps:$4 sm:$0xff]   ;;  %v3012_v59 = vld [vmem:[%s3671_s29 + $0x454] ss:$8 sps:$4 sm:$0xff]  }
 0x219   : > { %1689 = vmatpush1.msra.mxu0 %v3140_v61  ;;  %1760 = vmatpush1.msra.mxu1 %v3141_v62  ;;  %v3015_v60 = vld [vmem:[%s3671_s29 + $0x554] ss:$8 sps:$4 sm:$0xff]   ;;  %v3010_v61 = vld [vmem:[%s3671_s29 + $0x450] ss:$8 sps:$4 sm:$0xff]  }
 0x21a   : > { %1690 = vmatprep.subr.mxu0 %v3142_v63  ;;  %1761 = vmatprep.subr.mxu1 %v3143_v0  ;;  %v3013_v62 = vld [vmem:[%s3671_s29 + $0x550] ss:$8 sps:$4 sm:$0xff]   ;;  %v3018_v63 = vld [vmem:[%s3671_s29 + $0x444] ss:$8 sps:$4 sm:$0xff]  }
 0x21b   : > { %1691 = vmatpush1.msra.mxu0 %v3144_v1  ;;  %1762 = vmatpush1.msra.mxu1 %v3145_v3  ;;  %v3021_v0 = vld [vmem:[%s3671_s29 + $0x544] ss:$8 sps:$4 sm:$0xff]   ;;  %v3016_v1 = vld [vmem:[%s3671_s29 + $0x440] ss:$8 sps:$4 sm:$0xff]  }
 0x21c   : > { %1692 = vmatprep.subr.mxu0 %v3146_v5  ;;  %1763 = vmatprep.subr.mxu1 %v3147_v21  ;;  %v3019_v3 = vld [vmem:[%s3671_s29 + $0x540] ss:$8 sps:$4 sm:$0xff]   ;;  %v3024_v5 = vld [vmem:[%s3671_s29 + $0x434] ss:$8 sps:$4 sm:$0xff]  }
 0x21d   : > { %1693 = vmatpush1.msra.mxu0 %v3148_v17  ;;  %1764 = vmatpush1.msra.mxu1 %v3149_v6  ;;  %v3027_v21 = vld [vmem:[%s3671_s29 + $0x534] ss:$8 sps:$4 sm:$0xff]   ;;  %v3022_v17 = vld [vmem:[%s3671_s29 + $0x430] ss:$8 sps:$4 sm:$0xff]  }
 0x21e   : > { %1694 = vmatprep.subr.mxu0 %v3150_v7  ;;  %1765 = vmatprep.subr.mxu1 %v3151_v8  ;;  %v3025_v6 = vld [vmem:[%s3671_s29 + $0x530] ss:$8 sps:$4 sm:$0xff]   ;;  %v3030_v7 = vld [vmem:[%s3671_s29 + $0x424] ss:$8 sps:$4 sm:$0xff]  }
 0x21f   : > { %1695 = vmatpush1.msra.mxu0 %v3152_v9  ;;  %1766 = vmatpush1.msra.mxu1 %v3153_v10  ;;  %v3033_v8 = vld [vmem:[%s3671_s29 + $0x524] ss:$8 sps:$4 sm:$0xff]   ;;  %v3028_v9 = vld [vmem:[%s3671_s29 + $0x420] ss:$8 sps:$4 sm:$0xff]  }
 0x220   : > { %1696 = vmatprep.subr.mxu0 %v3154_v11  ;;  %1767 = vmatprep.subr.mxu1 %v3155_v12  ;;  %v3031_v10 = vld [vmem:[%s3671_s29 + $0x520] ss:$8 sps:$4 sm:$0xff]   ;;  %v3036_v11 = vld [vmem:[%s3671_s29 + $0x414] ss:$8 sps:$4 sm:$0xff]   ;;  %v3034_v12 = vld [vmem:[%s3671_s29 + $0x410] ss:$8 sps:$4 sm:$0xff]  }
 0x221   : > { %1697 = vmatpush1.msra.mxu0 %v3156_v13  ;;  %1768 = vmatpush1.msra.mxu1 %v3157_v14  ;;  %v3037_v13 = vld [vmem:[%s3671_s29 + $0x510] ss:$8 sps:$4 sm:$0xff]   ;;  %v3039_v14 = vld [vmem:[%s3671_s29 + $0x514] ss:$8 sps:$4 sm:$0xff]  }
 0x222   : > { %1714 = vmatprep.subr.mxu0 %v3158_v15  ;;  %1785 = vmatprep.subr.mxu1 %v3159_v16  ;;  %v3042_v15 = vld [vmem:[%s3671_s29 + $0x404] ss:$8 sps:$4 sm:$0xff]  }
 0x223   : > { %1715 = vmatpush2.msra.mxu0 %v3160_v32  ;;  %1786 = vmatpush2.msra.mxu1 %v3161_v33  ;;  %v3045_v16 = vld [vmem:[%s3671_s29 + $0x504] ss:$8 sps:$4 sm:$0xff]   ;;  %v3040_v32 = vld [vmem:[%s3671_s29 + $0x400] ss:$8 sps:$4 sm:$0xff]  }
 0x224   : > { %1716 = vmatprep.subr.mxu0 %v3162_v34  ;;  %1787 = vmatprep.subr.mxu1 %v3163_v35  ;;  %v3043_v33 = vld [vmem:[%s3671_s29 + $0x500] ss:$8 sps:$4 sm:$0xff]   ;;  %v3048_v34 = vld [vmem:[%s3671_s29 + $0x4f4] ss:$8 sps:$4 sm:$0xff]  }
 0x225   : > { %1717 = vmatpush2.msra.mxu0 %v3164_v36  ;;  %1788 = vmatpush2.msra.mxu1 %v3165_v37  ;;  %v3051_v35 = vld [vmem:[%s3671_s29 + $0x5f4] ss:$8 sps:$4 sm:$0xff]   ;;  %v3046_v36 = vld [vmem:[%s3671_s29 + $0x4f0] ss:$8 sps:$4 sm:$0xff]  }
 0x226   : > { %1718 = vmatprep.subr.mxu0 %v3166_v38  ;;  %1789 = vmatprep.subr.mxu1 %v3167_v39  ;;  %v3049_v37 = vld [vmem:[%s3671_s29 + $0x5f0] ss:$8 sps:$4 sm:$0xff]   ;;  %v3054_v38 = vld [vmem:[%s3671_s29 + $0x4e4] ss:$8 sps:$4 sm:$0xff]  }
 0x227   : > { %1719 = vmatpush2.msra.mxu0 %v3168_v40  ;;  %1790 = vmatpush2.msra.mxu1 %v3169_v41  ;;  %v3057_v39 = vld [vmem:[%s3671_s29 + $0x5e4] ss:$8 sps:$4 sm:$0xff]   ;;  %v3052_v40 = vld [vmem:[%s3671_s29 + $0x4e0] ss:$8 sps:$4 sm:$0xff]  }
 0x228   : > { %1720 = vmatprep.subr.mxu0 %v3170_v42  ;;  %1791 = vmatprep.subr.mxu1 %v3171_v43  ;;  %v3055_v41 = vld [vmem:[%s3671_s29 + $0x5e0] ss:$8 sps:$4 sm:$0xff]   ;;  %v3060_v42 = vld [vmem:[%s3671_s29 + $0x4d4] ss:$8 sps:$4 sm:$0xff]  }
 0x229   : > { %1721 = vmatpush2.msra.mxu0 %v3172_v44  ;;  %1792 = vmatpush2.msra.mxu1 %v3173_v30  ;;  %v3063_v43 = vld [vmem:[%s3671_s29 + $0x5d4] ss:$8 sps:$4 sm:$0xff]   ;;  %v3058_v44 = vld [vmem:[%s3671_s29 + $0x4d0] ss:$8 sps:$4 sm:$0xff]  }
 0x22a   : > { %1722 = vmatprep.subr.mxu0 %v3174_v23  ;;  %1793 = vmatprep.subr.mxu1 %v3175_v29  ;;  %v3061_v30 = vld [vmem:[%s3671_s29 + $0x5d0] ss:$8 sps:$4 sm:$0xff]   ;;  %v3069_v23 = vld [vmem:[%s3671_s29 + $0x5c4] ss:$8 sps:$4 sm:$0xff]   ;;  %v3064_v29 = vld [vmem:[%s3671_s29 + $0x4c0] ss:$8 sps:$4 sm:$0xff]  }
 0x22b   : > { %1723 = vmatpush2.msra.mxu0 %v3176_v31  ;;  %1794 = vmatpush2.msra.mxu1 %v3177_v26  ;;  %v3067_v31 = vld [vmem:[%s3671_s29 + $0x5c0] ss:$8 sps:$4 sm:$0xff]   ;;  %v3072_v26 = vld [vmem:[%s3671_s29 + $0x4b4] ss:$8 sps:$4 sm:$0xff]  }
 0x22c   : > { %1724 = vmatprep.subr.mxu0 %v3178_v24  ;;  %1795 = vmatprep.subr.mxu1 %v3179_v22  ;;  %v3075_v24 = vld [vmem:[%s3671_s29 + $0x5b4] ss:$8 sps:$4 sm:$0xff]   ;;  %v3070_v22 = vld [vmem:[%s3671_s29 + $0x4b0] ss:$8 sps:$4 sm:$0xff]  }
 0x22d   : > { %1725 = vmatpush2.msra.mxu0 %v3180_v18  ;;  %1796 = vmatpush2.msra.mxu1 %v3181_v45  ;;  %v3073_v18 = vld [vmem:[%s3671_s29 + $0x5b0] ss:$8 sps:$4 sm:$0xff]   ;;  %v3078_v45 = vld [vmem:[%s3671_s29 + $0x4a4] ss:$8 sps:$4 sm:$0xff]  }
 0x22e   : > { %1726 = vmatprep.subr.mxu0 %v3182_v47  ;;  %1797 = vmatprep.subr.mxu1 %v3183_v48  ;;  %v3076_v47 = vld [vmem:[%s3671_s29 + $0x4a0] ss:$8 sps:$4 sm:$0xff]  }
 0x22f   : > { %1727 = vmatpush2.msra.mxu0 %v3184_v49  ;;  %1798 = vmatpush2.msra.mxu1 %v3185_v50  ;;  %v3079_v48 = vld [vmem:[%s3671_s29 + $0x5a0] ss:$8 sps:$4 sm:$0xff]   ;;  %v3084_v49 = vld [vmem:[%s3671_s29 + $0x494] ss:$8 sps:$4 sm:$0xff]  }
 0x230   : > { %1728 = vmatprep.subr.mxu0 %v3186_v51  ;;  %1799 = vmatprep.subr.mxu1 %v3187_v52  ;;  %v3087_v50 = vld [vmem:[%s3671_s29 + $0x594] ss:$8 sps:$4 sm:$0xff]   ;;  %v3082_v51 = vld [vmem:[%s3671_s29 + $0x490] ss:$8 sps:$4 sm:$0xff]  }
 0x231   : > { %1729 = vmatpush2.msra.mxu0 %v3188_v20  ;;  %2621 = vmatprep.mubr.msk.f32.mxu0 %vm356_vm0, %v1662_v46  ;;  %v3085_v52 = vld [vmem:[%s3671_s29 + $0x590] ss:$8 sps:$4 sm:$0xff]   ;;  %v3088_v20 = vld [vmem:[%s3671_s29 + $0x480] ss:$8 sps:$4 sm:$0xff]  }
 0x232   : > { %1800 = vmatpush2.msra.mxu1 %v3189_v54  ;;  %2622 = vmatprep.mubr.msk.f32.mxu1 %vm356_vm0, %v1662_v46  ;;  %v3081_v46 = vld [vmem:[%s3671_s29 + $0x5a4] ss:$8 sps:$4 sm:$0xff]  }
 0x233   : > { %1731 = vmatmul.mubr.f32.vlgmr.msra.gmra.mxu0 %v2620_v27  ;;  %1802 = vmatmul.mubr.f32.vlgmr.msra.gmra.mxu1 %v2620_v27  ;;  %v3066_v27 = vld [vmem:[%s3671_s29 + $0x4c4] ss:$8 sps:$4 sm:$0xff]  }
 0x234   : > { %2210 = vmatprep.subr.bf16.mxu0 %v3000_v19  ;;  %2251 = vmatprep.subr.bf16.mxu1 %v3003_v25  ;;  %v3090_v19 = vld [vmem:[%s3671_s29 + $0x484] ss:$8 sps:$4 sm:$0xff]  }
 0x235   : > { %2211 = vmatpush1.bf16.msra.mxu0 %v2998_v28  ;;  %2252 = vmatpush1.bf16.msra.mxu1 %v3001_v53  ;;  %v3093_v25 = vld [vmem:[%s3671_s29 + $0x584] ss:$8 sps:$4 sm:$0xff]   ;;  %v3091_v28 = vld [vmem:[%s3671_s29 + $0x580] ss:$8 sps:$4 sm:$0xff]   ;;  %s2763_s29 = smul.u32 192, %s3301_s19  ;;  %s4552_s19 = scalar_lea.sflag [#allocation3], %s225_s23 }
 0x236   : > { %2212 = vmatprep.subr.bf16.mxu0 %v3006_v55  ;;  %2253 = vmatprep.subr.bf16.mxu1 %v3009_v56  ;;  %v2553_v53 = vld [vmem:[%s4229_s8 + $0x2] sm:$0x3] }
 0x237   : > { %v1228_v54 = vrot.slane %v2553_v53, %v4231_v2  ;;  %v1232_v55 = vrot.slane %v2553_v53, %v4234_v4  ;;  %s4547_s6 = scalar_lea.hbm %s4596_s4, %s2763_s29 }
 0x239   : > { %2213 = vmatpush1.bf16.msra.mxu0 %v3004_v57  ;;  %2254 = vmatpush1.bf16.msra.mxu1 %v3007_v58 }
 0x23a   : > { %2214 = vmatprep.subr.bf16.mxu0 %v3012_v59  ;;  %2255 = vmatprep.subr.bf16.mxu1 %v3015_v60 }
 0x23d   : > { %2215 = vmatpush1.bf16.msra.mxu0 %v3010_v61  ;;  %2256 = vmatpush1.bf16.msra.mxu1 %v3013_v62 }
 0x23e   : > { %2216 = vmatprep.subr.bf16.mxu0 %v3018_v63  ;;  %2257 = vmatprep.subr.bf16.mxu1 %v3021_v0 }
 0x241   : > { %2217 = vmatpush1.bf16.msra.mxu0 %v3016_v1  ;;  %2258 = vmatpush1.bf16.msra.mxu1 %v3019_v3 }
 0x242   : > { %2218 = vmatprep.subr.bf16.mxu0 %v3024_v5  ;;  %2259 = vmatprep.subr.bf16.mxu1 %v3027_v21 }
 0x245   : > { %2219 = vmatpush1.bf16.msra.mxu0 %v3022_v17  ;;  %2260 = vmatpush1.bf16.msra.mxu1 %v3025_v6 }
 0x246   : > { %2220 = vmatprep.subr.bf16.mxu0 %v3030_v7  ;;  %2261 = vmatprep.subr.bf16.mxu1 %v3033_v8 }
 0x249   : > { %2221 = vmatpush1.bf16.msra.mxu0 %v3028_v9  ;;  %2262 = vmatpush1.bf16.msra.mxu1 %v3031_v10 }
 0x24a   : > { %2222 = vmatprep.subr.bf16.mxu0 %v3036_v11  ;;  %2263 = vmatprep.subr.bf16.mxu1 %v3039_v14 }
 0x24d   : > { %2223 = vmatpush1.bf16.msra.mxu0 %v3034_v12  ;;  %2264 = vmatpush1.bf16.msra.mxu1 %v3037_v13 }
 0x24e   : > { %2224 = vmatprep.subr.bf16.mxu0 %v3042_v15  ;;  %2265 = vmatprep.subr.bf16.mxu1 %v3045_v16  ;;  %v2687_v15 = vld [vmem:[%s4229_s8 + $0x4] sm:$0x3] }
 0x24f   : > { %v1883_v16 = vrot.slane %v2687_v15, %v4231_v2 }
 0x251   : > { %2225 = vmatpush1.bf16.msra.mxu0 %v3040_v32  ;;  %2266 = vmatpush1.bf16.msra.mxu1 %v3043_v33  ;;  %v1887_v32 = vrot.slane %v2687_v15, %v4234_v4 }
 0x252   : > { %2226 = vmatprep.subr.bf16.mxu0 %v3048_v34  ;;  %2267 = vmatprep.subr.bf16.mxu1 %v3051_v35 }
 0x255   : > { %2227 = vmatpush2.bf16.msra.mxu0 %v3046_v36  ;;  %2268 = vmatpush2.bf16.msra.mxu1 %v3049_v37 }
 0x256   : > { %2228 = vmatprep.subr.bf16.mxu0 %v3054_v38  ;;  %2269 = vmatprep.subr.bf16.mxu1 %v3057_v39 }
 0x259   : > { %2229 = vmatpush2.bf16.msra.mxu0 %v3052_v40  ;;  %2270 = vmatpush2.bf16.msra.mxu1 %v3055_v41 }
 0x25a   : > { %2230 = vmatprep.subr.bf16.mxu0 %v3060_v42  ;;  %2271 = vmatprep.subr.bf16.mxu1 %v3063_v43 }
 0x25d   : > { %2231 = vmatpush2.bf16.msra.mxu0 %v3058_v44  ;;  %2272 = vmatpush2.bf16.msra.mxu1 %v3061_v30 }
 0x25e   : > { %2232 = vmatprep.subr.bf16.mxu0 %v3066_v27  ;;  %2273 = vmatprep.subr.bf16.mxu1 %v3069_v23 }
 0x261   : > { %2233 = vmatpush2.bf16.msra.mxu0 %v3064_v29  ;;  %2274 = vmatpush2.bf16.msra.mxu1 %v3067_v31 }
 0x262   : > { %2234 = vmatprep.subr.bf16.mxu0 %v3072_v26  ;;  %2275 = vmatprep.subr.bf16.mxu1 %v3075_v24 }
 0x265   : > { %2235 = vmatpush2.bf16.msra.mxu0 %v3070_v22  ;;  %2276 = vmatpush2.bf16.msra.mxu1 %v3073_v18 }
 0x266   : > { %2236 = vmatprep.subr.bf16.mxu0 %v3078_v45  ;;  %2277 = vmatprep.subr.bf16.mxu1 %v3081_v46 }
 0x269   : > { %2237 = vmatpush2.bf16.msra.mxu0 %v3076_v47  ;;  %2278 = vmatpush2.bf16.msra.mxu1 %v3079_v48 }
 0x26a   : > { %2238 = vmatprep.subr.bf16.mxu0 %v3084_v49  ;;  %2279 = vmatprep.subr.bf16.mxu1 %v3087_v50 }
 0x26d   : > { %2239 = vmatpush2.bf16.msra.mxu0 %v3082_v51  ;;  %2280 = vmatpush2.bf16.msra.mxu1 %v3085_v52 }
 0x26e   : > { %2240 = vmatprep.subr.bf16.mxu0 %v3090_v19  ;;  %2281 = vmatprep.subr.bf16.mxu1 %v3093_v25 }
 0x271   : > { %2241 = vmatpush2.bf16.msra.mxu0 %v3088_v20  ;;  %2282 = vmatpush2.bf16.msra.mxu1 %v3091_v28 }
 0x2c2   : > { %v1589_v56 = vpop.f32.mrf.mxu0  ;;  %v1630_v57 = vpop.f32.mrf.mxu1 }
 0x2c3   : > { %v1590_v58 = vadd.f32 %v1589_v56, %v1228_v54 }
 0x2c4   : > { %v1591_v59 = vpop.f32.mrf.mxu0  ;;  %v1632_v60 = vpop.f32.mrf.mxu1 }
 0x2c5   : > { %v1631_v61 = vadd.f32 %v1630_v57, %v1590_v58  ;;  %v1592_v62 = vadd.f32 %v1591_v59, %v1232_v55 }
 0x2c6   : > { %v1593_v63 = vpop.f32.mrf.mxu0  ;;  %v1634_v0 = vpop.f32.mrf.mxu1 }
 0x2c7   : > { %v1633_v1 = vadd.f32 %v1632_v60, %v1592_v62  ;;  %v1637_v21 = vmax.f32 %v1631_v61, 0.0 }
 0x2c8   : > { %v1594_v3 = vpop.f32.mrf.mxu0  ;;  %v1635_v5 = vpop.f32.mrf.mxu1 }
 0x2c9   : > { %v1638_v17 = vmax.f32 %v1633_v1, 0.0 }
 0x2cb   : > { %v1641_v6 = vcombine.low %v1637_v21, %v1638_v17 }
 0x2cd   : > { %2759 = vst.sshfl [vmem:[%s4241_s9 + $0x4] sm:$0x33 pattern:$0x76325410] %v1641_v6 }
 0x2f3   : > { %v1732_v7 = vpop.f32.mrf.mxu0  ;;  %v1803_v8 = vpop.f32.mrf.mxu1 }
 0x2f4   : > { %v1810_v9 = vpack.c.bf16 %v1803_v8, %v1803_v8  ;;  %v1808_v14 = vpack.c.bf16 %v1732_v7, %v1732_v7 }
 0x2f5   : > { %v1734_v10 = vpop.f32.mrf.mxu0  ;;  %v1805_v11 = vpop.f32.mrf.mxu1 }
 0x2f6   : > { %v1809_v12 = vpack.c.bf16 %v1734_v10, %v1734_v10  ;;  %v1811_v13 = vpack.c.bf16 %v1805_v11, %v1805_v11 }
 0x2f8   : > { %2242 = vmatprep.mubr.bf16.mxu0 %v1809_v12  ;;  %2283 = vmatprep.mubr.bf16.mxu1 %v1811_v13 }
 0x2f9   : > { %2243 = vmatmul.mubr.bf16.vlgmr.msra.gmra.mxu0 %v1808_v14  ;;  %2284 = vmatmul.mubr.bf16.vlgmr.msra.gmra.mxu1 %v1810_v9 }
 0x3b9   : > { %v2244_v33 = vpop.f32.mrf.mxu0  ;;  %v2285_v34 = vpop.f32.mrf.mxu1 }
 0x3ba   : > { %v2245_v35 = vadd.f32 %v2244_v33, %v1883_v16 }
 0x3bb   : > { %v2246_v36 = vpop.f32.mrf.mxu0  ;;  %v2287_v37 = vpop.f32.mrf.mxu1 }
 0x3bc   : > { %v2286_v38 = vadd.f32 %v2285_v34, %v2245_v35  ;;  %v2247_v39 = vadd.f32 %v2246_v36, %v1887_v32 }
 0x3bd   : > { %v2248_v40 = vpop.f32.mrf.mxu0  ;;  %v2289_v41 = vpop.f32.mrf.mxu1 }
 0x3be   : > { %v2288_v42 = vadd.f32 %v2287_v37, %v2247_v39  ;;  %v2292_v2 = vmax.f32 %v2286_v38, 0.0 }
 0x3bf   : > { %v2249_v43 = vpop.f32.mrf.mxu0  ;;  %v2290_v44 = vpop.f32.mrf.mxu1 }
 0x3c0   : > { %v2293_v30 = vmax.f32 %v2288_v42, 0.0 }
 0x3c2   : > { %v2296_v4 = vcombine.low %v2292_v2, %v2293_v30 }
 0x3c4   : > { %2760 = vst.sshfl [vmem:[%s4241_s9 + $0x8] sm:$0x33 pattern:$0x76325410] %v2296_v4 }
 0x3c5   : > { %3203 = shalt.err (!%p3200_p3)
}
 0x3c6   : > { %s3204_s23 = scalar_lea.hbm %s4547_s6, 192  ;;  %s3208_s11 = scalar_lea.hbm %s4596_s4, 384 }
 0x3c7   : > { %p3205_p4 = scmp.ne.s32.totalorder %s4547_s6, %s3204_s23  ;;  %p3209_p9 = scmp.lt.s32.totalorder %s4547_s6, %s4596_s4 }
 0x3c8   : > { %p3210_p10 = scmp.lt.s32.totalorder %s3208_s11, %s3204_s23 }
 0x3c9   : > { %p3206_p7 = pnand %p3205_p4, %p3318_p5 }
 0x3ca   : > { %p3211_p11 = por %p3210_p10, %p3209_p9 }
 0x3cb   : > { %p3207_p8 = pneg %p3206_p7 }
 0x3cd   : > { %p3212_p12 = pnand %p3211_p11, %p3207_p8 }
 0x3cf   : > { %3215 = shalt.err (!%p3212_p12)
}
 0x3d0   : > { %s3253_s20 = smov 64   ;;  %s3254_s22 = smov 4  }
 0x3d1   : > { %2765 = dma.vmem_to_hbm [thread:$0]  (%p3318_p5), %s4542_s28, 192, %s4547_s6, %s4552_s19, %s3253_s20, %s3253_s20, %s3254_s22  }
 0x3d2 PF: > { %p2771_p13 = scmp.ge.s32.totalorder %s3250_s18, 2  ;;  %s2337_s29 = sand.u32 1, %s3238_s15  }
 0x3d3   : > { %s2338_s8 = scalar_lea.sflag [#allocation3], %s2337_s29 }
 0x3d4   : > { %p2768_p0 = pnand %p2771_p13, %p3322_p6 }
 0x3d6   : > { %p2769_p1 = pneg %p2768_p0 }
 0x3d8   : > { %3233 = dma.done.wait (%p2769_p1), %s2338_s8, 192  }
 0x3d9   : > { %3235 = vsyncadd (%p2769_p1), %s2338_s8, 4294967104  ;;  %p14_p2 = scmp.ge.s32.totalorder %s3305_s21, 4   ;;  %s4696_s15 = smov %s3242_s16 }
 0x3da   : > { %s4697_s16 = smov %s3246_s17  ;;  %s4698_s17 = smov %s3316_s24 }
 0x3db   : > { %s4699_s18 = smov %s3305_s21  ;;  %16 = sbr.rel (!%p14_p2) target bundleno = 3 (0x3), region = 85 }
 0x3e0   :  { %2343 = vsyncpa [#allocation3], 1 }
 0x3e1   :  { %2345 = vsyncpa [#allocation3 + $0x1], 1 }

</bundles_post_ra>
